<compile_context>
chip_gen: v7x
topology: tpu7x:2x2x1
jax: 0.10.0
libtpu: 0.0.40
codegen_flags: <defaults>
</compile_context>

<pallas_src>
import functools

import jax
import jax.numpy as jnp
from jax import lax
from jax.experimental import pallas as pl
from jax.experimental.pallas import tpu as pltpu


def _sab_kernel(gamma_ref, x_ref, mask_ref, wc_ref, bc_ref, ww_ref, wh_ref,
                o_ref, k_scr, v_scr, *, w_dim, c8p, key_tile):
    """Processes a (block_b, C, N=H*W) slab of the batch per grid step."""
    bb, c, n = x_ref.shape
    f32 = jnp.float32
    gamma = gamma_ref[0]                          # scalar (SMEM)
    num_kt = n // key_tile

    masks = mask_ref[...]                         # (4, N), activation dtype
    m_wm, m_wp = masks[0:1], masks[1:2]           # col > 0, col < W-1
    m_hm, m_hp = masks[2:3], masks[3:4]           # row > 0, row < H-1

    w_center = wc_ref[...]                        # (2*C8p + C, C)  BN folded
    b_center = bc_ref[...]                        # (2*C8p + C, 1)  f32
    w_wshift = ww_ref[...]                        # (C8p, 2C)  q taps at W -/+ 1
    w_hshift = wh_ref[...]                        # (C8p, 2C)  k taps at H -/+ 1

    def process(b):
        x = x_ref[b]                              # (C, N), activation dtype
        dt = x.dtype

        # Spatial shifts as XLU lane rotations; wrap-around columns are exactly
        # the conv zero-padding positions and are killed by the masks.
        x_wm = pltpu.roll(x, 1, axis=1) * m_wm            # x[:, i-1]
        x_wp = pltpu.roll(x, n - 1, axis=1) * m_wp        # x[:, i+1]
        x_hm = pltpu.roll(x, w_dim, axis=1) * m_hm        # x[:, i-W]
        x_hp = pltpu.roll(x, n - w_dim, axis=1) * m_hp    # x[:, i+W]

        # Fused projections: 3 matmuls instead of 7 (biases already stacked).
        center = jnp.dot(w_center, x, preferred_element_type=f32) + b_center
        q_sh = jnp.dot(w_wshift, jnp.concatenate([x_wm, x_wp], axis=0),
                       preferred_element_type=f32)
        k_sh = jnp.dot(w_hshift, jnp.concatenate([x_hm, x_hp], axis=0),
                       preferred_element_type=f32)

        # NOTE: for a bf16 activation path keep q/k in f32 here if tolerance
        # versus an f32 reference matters.
        q = jnp.maximum(center[0:c8p] + q_sh, 0.0).astype(dt)          # (C8p, N)
        k = jnp.maximum(center[c8p:2 * c8p] + k_sh, 0.0).astype(dt)    # (C8p, N)
        v = center[2 * c8p:].astype(dt)                                # (C, N)

        # Flash-style attention over key tiles.  Affinity tiles are laid out
        # (keys, queries) so the running softmax stats stay lane-major (1, N);
        # normalization is applied once to the (C, N) accumulator at the end.
        def kv_step(t, carry):
            m_run, l_run, acc = carry
            if num_kt == 1:
                k_t, v_t = k, v
            else:
                start = pl.multiple_of(t * key_tile, key_tile)
                k_t = k_scr[:, pl.ds(start, key_tile)]                 # (C8p, TK)
                v_t = v_scr[:, pl.ds(start, key_tile)]                 # (C, TK)
            # Contract the channel (sublane) axis of both operands: no explicit
            # transpose of q or k is materialized.
            s = lax.dot_general(k_t, q, (((0,), (0,)), ((), ())),
                                preferred_element_type=f32)            # (TK, N)
            m_new = jnp.maximum(m_run, jnp.max(s, axis=0, keepdims=True))
            alpha = jnp.exp(m_run - m_new)                             # (1, N)
            p = jnp.exp(s - m_new)                                     # (TK, N)
            l_new = alpha * l_run + jnp.sum(p, axis=0, keepdims=True)
            acc_new = acc * alpha + jnp.dot(v_t, p.astype(dt),
                                            preferred_element_type=f32)
            return m_new, l_new, acc_new

        init = (jnp.full((1, n), -jnp.inf, f32),
                jnp.zeros((1, n), f32),
                jnp.zeros((c, n), f32))
        if num_kt == 1:
            _, l_run, acc = kv_step(0, init)
        else:
            k_scr[...] = k
            v_scr[...] = v
            _, l_run, acc = lax.fori_loop(0, num_kt, kv_step, init)

        wts = acc * pl.reciprocal(l_run, approx=False)                 # (C, N)
        o_ref[b] = (gamma * wts + x.astype(f32)).astype(o_ref.dtype)

    if bb == 1:
        process(0)
    else:
        pl.loop(0, bb)(process)   # bounded live ranges across batch elements


def _prepare_params(params, x_dtype, h, w):
    """Folds eval-mode BatchNorm into the conv weights, pads the C//8 projection
    channels to a full sublane group, and packs the conv taps into the 3 fused
    matmul weights plus the W/H boundary masks used by the kernel."""
    eps = 1e-5

    def fold(wc, bc, g, beta, mean, var):
        s = g / jnp.sqrt(var + eps)
        return wc * s[:, None, None, None], (bc - mean) * s + beta

    wq_f, bq_f = fold(params["wq"], params["bq"], params["q_bn_w"],
                      params["q_bn_b"], params["q_bn_mean"], params["q_bn_var"])
    wk_f, bk_f = fold(params["wk"], params["bk"], params["k_bn_w"],
                      params["k_bn_b"], params["k_bn_mean"], params["k_bn_var"])

    c8, c = wq_f.shape[0], wq_f.shape[1]
    sub = 16 if x_dtype == jnp.bfloat16 else 8      # fill a (packed) vreg sublane group
    c8p = ((c8 + sub - 1) // sub) * sub
    pad = c8p - c8

    wq_taps = jnp.transpose(wq_f[:, :, 0, :], (2, 0, 1))   # (3, C8, C): taps W-1, W, W+1
    wk_taps = jnp.transpose(wk_f[:, :, :, 0], (2, 0, 1))   # (3, C8, C): taps H-1, H, H+1
    if pad:
        # Padded rows have zero weight AND zero bias; ReLU(0)=0 keeps them inert
        # in the affinity contraction.
        wq_taps = jnp.pad(wq_taps, ((0, 0), (0, pad), (0, 0)))
        wk_taps = jnp.pad(wk_taps, ((0, 0), (0, pad), (0, 0)))
        bq_f = jnp.pad(bq_f, (0, pad))
        bk_f = jnp.pad(bk_f, (0, pad))

    wv_m = params["wv"][:, :, 0, 0]                        # (C, C)
    bv = params["bv"]

    # Fused weights: one stacked center matmul + one matmul per shift direction.
    w_center = jnp.concatenate([wq_taps[1], wk_taps[1], wv_m], axis=0)   # (2*C8p+C, C)
    b_center = jnp.concatenate([bq_f, bk_f, bv], axis=0)[:, None]        # (2*C8p+C, 1)
    w_wshift = jnp.concatenate([wq_taps[0], wq_taps[2]], axis=1)         # (C8p, 2C)
    w_hshift = jnp.concatenate([wk_taps[0], wk_taps[2]], axis=1)         # (C8p, 2C)

    n = h * w
    idx = jnp.arange(n, dtype=jnp.int32)
    col, row = idx % w, idx // w
    masks = jnp.stack([col > 0, col < w - 1, row > 0, row < h - 1]).astype(x_dtype)

    return (masks, w_center.astype(x_dtype), b_center.astype(jnp.float32),
            w_wshift.astype(x_dtype), w_hshift.astype(x_dtype), c8p)


@functools.partial(jax.jit,
                   static_argnames=("block_b", "key_tile", "vmem_limit_bytes"))
def spatial_attention_block(x, params, *, block_b=1, key_tile=None,
                            vmem_limit_bytes=None):
    """x: (B, C, H, W); params: dict of conv/BN/gamma parameters.

    On v7x keep B // block_b >= 2 so the 'parallel' batch grid axis can shard
    across both TensorCores, and size vmem_limit_bytes / key_tile for 64 MiB.
    """
    B, C, H, W = x.shape
    N = H * W
    assert B % block_b == 0, "block_b must divide the batch size"
    # TODO(synk): pad N to a multiple of 128 (with masked softmax columns) when
    # H*W % 128 != 0 so output stores stay lane-dense.

    if key_tile is None:
        key_tile = next((t for t in (1024, 512, 256, 128) if N % t == 0), N)
    assert N % key_tile == 0, "key_tile must divide H*W"

    (masks, w_center, b_center, w_wshift, w_hshift, c8p) = _prepare_params(
        params, x.dtype, H, W)
    m0 = w_center.shape[0]                      # 2*C8p + C
    x_flat = x.reshape(B, C, N)
    gamma = params["gamma"].reshape((1,)).astype(jnp.float32)

    kernel = functools.partial(_sab_kernel, w_dim=W, c8p=c8p, key_tile=key_tile)

    out_flat = pl.pallas_call(
        kernel,
        out_shape=jax.ShapeDtypeStruct((B, C, N), x.dtype),
        grid_spec=pltpu.PrefetchScalarGridSpec(
            num_scalar_prefetch=0,
            grid=(B // block_b,),
            in_specs=[
                pl.BlockSpec(memory_space=pltpu.SMEM),                # gamma (1,)
                pl.BlockSpec((block_b, C, N), lambda i: (i, 0, 0)),   # x
                pl.BlockSpec((4, N), lambda i: (0, 0)),               # boundary masks
                pl.BlockSpec((m0, C), lambda i: (0, 0)),              # stacked center W
                pl.BlockSpec((m0, 1), lambda i: (0, 0)),              # stacked biases
                pl.BlockSpec((c8p, 2 * C), lambda i: (0, 0)),         # W-shift taps (q)
                pl.BlockSpec((c8p, 2 * C), lambda i: (0, 0)),         # H-shift taps (k)
            ],
            out_specs=pl.BlockSpec((block_b, C, N), lambda i: (i, 0, 0)),
            scratch_shapes=[
                pltpu.VMEM((c8p, N), x.dtype),    # key staging for dynamic tiles
                pltpu.VMEM((C, N), x.dtype),      # value staging for dynamic tiles
            ],
        ),
        compiler_params=pltpu.CompilerParams(
            dimension_semantics=("parallel",),
            vmem_limit_bytes=vmem_limit_bytes,
        ),
    )(gamma, x_flat, masks, w_center, b_center, w_wshift, w_hshift)

    return out_flat.reshape(B, C, H, W)


def _reference(x, p):
    """Pure-JAX reference (conv + BN eval + ReLU projections, spatial attention)."""
    eps = 1e-5

    def conv(y, wgt, b, pad):
        out = lax.conv_general_dilated(
            y, wgt, window_strides=(1, 1), padding=pad,
            dimension_numbers=("NCHW", "OIHW", "NCHW"),
            precision=lax.Precision.HIGHEST)
        return out + b[None, :, None, None]

    def bn(y, g, beta, mean, var):
        return ((y - mean[None, :, None, None])
                / jnp.sqrt(var[None, :, None, None] + eps)
                * g[None, :, None, None] + beta[None, :, None, None])

    B, C, H, W = x.shape
    N = H * W
    q = jax.nn.relu(bn(conv(x, p["wq"], p["bq"], ((0, 0), (1, 1))),
                       p["q_bn_w"], p["q_bn_b"], p["q_bn_mean"], p["q_bn_var"]))
    k = jax.nn.relu(bn(conv(x, p["wk"], p["bk"], ((1, 1), (0, 0))),
                       p["k_bn_w"], p["k_bn_b"], p["k_bn_mean"], p["k_bn_var"]))
    v = conv(x, p["wv"], p["bv"], ((0, 0), (0, 0)))

    qf = q.reshape(B, -1, N).transpose(0, 2, 1)              # (B, N, C8)
    kf = k.reshape(B, -1, N)                                 # (B, C8, N)
    aff = jax.nn.softmax(
        jnp.matmul(qf, kf, precision=lax.Precision.HIGHEST), axis=-1)
    vf = v.reshape(B, C, N)
    wts = jnp.matmul(vf, aff.transpose(0, 2, 1), precision=lax.Precision.HIGHEST)
    return p["gamma"] * wts.reshape(B, C, H, W) + x


if __name__ == "__main__":
    key = jax.random.PRNGKey(0)
    # in_channels must be >= 8 so the query/key projections (C // 8) exist.
    B, C, H, W = 2, 16, 16, 16
    C8 = C // 8
    keys = jax.random.split(key, 16)
    s = 0.2

    x = jax.random.normal(keys[0], (B, C, H, W), jnp.float32)
    params = {
        "wq": s * jax.random.normal(keys[1], (C8, C, 1, 3), jnp.float32),
        "bq": s * jax.random.normal(keys[2], (C8,), jnp.float32),
        "q_bn_w": 1.0 + 0.1 * jax.random.normal(keys[3], (C8,), jnp.float32),
        "q_bn_b": 0.1 * jax.random.normal(keys[4], (C8,), jnp.float32),
        "q_bn_mean": 0.1 * jax.random.normal(keys[5], (C8,), jnp.float32),
        "q_bn_var": 1.0 + jnp.abs(0.1 * jax.random.normal(keys[6], (C8,), jnp.float32)),
        "wk": s * jax.random.normal(keys[7], (C8, C, 3, 1), jnp.float32),
        "bk": s * jax.random.normal(keys[8], (C8,), jnp.float32),
        "k_bn_w": 1.0 + 0.1 * jax.random.normal(keys[9], (C8,), jnp.float32),
        "k_bn_b": 0.1 * jax.random.normal(keys[10], (C8,), jnp.float32),
        "k_bn_mean": 0.1 * jax.random.normal(keys[11], (C8,), jnp.float32),
        "k_bn_var": 1.0 + jnp.abs(0.1 * jax.random.normal(keys[12], (C8,), jnp.float32)),
        "wv": s * jax.random.normal(keys[13], (C, C, 1, 1), jnp.float32),
        "bv": s * jax.random.normal(keys[14], (C,), jnp.float32),
        "gamma": jnp.zeros((1,), jnp.float32),   # nn.Parameter(torch.zeros(1))
    }

    # 1) default init (gamma = 0): one batch element per grid step, single key tile.
    out = spatial_attention_block(x, params, block_b=1)
    jax.block_until_ready(out)
    ref = _reference(x, params)
    assert jnp.allclose(out, ref, atol=2e-4, rtol=2e-4), "gamma=0 mismatch"

    # 2) non-trivial gamma: exercises the in-kernel batch loop (block_b=2) and
    #    the flash-style key tiling / online softmax path (key_tile=128 -> 2 tiles).
    params_nz = dict(params, gamma=jnp.full((1,), 0.5, jnp.float32))
    out_nz = spatial_attention_block(x, params_nz, block_b=2, key_tile=128)
    jax.block_until_ready(out_nz)
    ref_nz = _reference(x, params_nz)
    assert jnp.allclose(out_nz, ref_nz, atol=2e-4, rtol=2e-4), "gamma=0.5 mismatch"

    print("KERNEL_OK")
</pallas_src>

<mosaic_0001>
module attributes {stable_mosaic.version = 11 : i64} {
  func.func @_sab_kernel(%arg0: i32, %arg1: memref<1xf32, #tpu.memory_space<smem>>, %arg2: memref<1x16x256xf32, #tpu.memory_space<vmem>>, %arg3: memref<4x256xf32, #tpu.memory_space<vmem>>, %arg4: memref<32x16xf32, #tpu.memory_space<vmem>>, %arg5: memref<32x1xf32, #tpu.memory_space<vmem>>, %arg6: memref<8x32xf32, #tpu.memory_space<vmem>>, %arg7: memref<8x32xf32, #tpu.memory_space<vmem>>, %arg8: memref<1x16x256xf32, #tpu.memory_space<vmem>>, %arg9: memref<8x256xf32, #tpu.memory_space<vmem>>, %arg10: memref<16x256xf32, #tpu.memory_space<vmem>>) attributes {dimension_semantics = [#tpu.dimension_semantics<parallel>], iteration_bounds = array<i64: 2>, scalar_prefetch = 0 : i64, scratch_operands = 2 : i64, tpu.core_type = #tpu.core_type<tc>, window_params = [{transform_indices = @transform_0, window_bounds = array<i64: 1>}, {transform_indices = @transform_1, window_bounds = array<i64: 1, 16, 256>}, {pipeline_mode = #tpu.pipeline_mode<synchronous>, transform_indices = @transform_2, window_bounds = array<i64: 4, 256>}, {pipeline_mode = #tpu.pipeline_mode<synchronous>, transform_indices = @transform_3, window_bounds = array<i64: 32, 16>}, {pipeline_mode = #tpu.pipeline_mode<synchronous>, transform_indices = @transform_4, window_bounds = array<i64: 32, 1>}, {pipeline_mode = #tpu.pipeline_mode<synchronous>, transform_indices = @transform_5, window_bounds = array<i64: 8, 32>}, {pipeline_mode = #tpu.pipeline_mode<synchronous>, transform_indices = @transform_6, window_bounds = array<i64: 8, 32>}, {transform_indices = @transform_7, window_bounds = array<i64: 1, 16, 256>}]} {
    %c0 = arith.constant 0 : index
    %0 = memref.load %arg1[%c0] : memref<1xf32, #tpu.memory_space<smem>>
    %c0_0 = arith.constant 0 : index
    %c0_1 = arith.constant 0 : index
    %1 = vector.load %arg3[%c0_0, %c0_1] : memref<4x256xf32, #tpu.memory_space<vmem>>, vector<4x256xf32>
    %2 = vector.extract_strided_slice %1 {offsets = [0, 0], sizes = [1, 256], strides = [1, 1]} : vector<4x256xf32> to vector<1x256xf32>
    %3 = vector.extract_strided_slice %1 {offsets = [1, 0], sizes = [1, 256], strides = [1, 1]} : vector<4x256xf32> to vector<1x256xf32>
    %4 = vector.extract_strided_slice %1 {offsets = [2, 0], sizes = [1, 256], strides = [1, 1]} : vector<4x256xf32> to vector<1x256xf32>
    %5 = vector.extract_strided_slice %1 {offsets = [3, 0], sizes = [1, 256], strides = [1, 1]} : vector<4x256xf32> to vector<1x256xf32>
    %c0_2 = arith.constant 0 : index
    %c0_3 = arith.constant 0 : index
    %6 = vector.load %arg4[%c0_2, %c0_3] : memref<32x16xf32, #tpu.memory_space<vmem>>, vector<32x16xf32>
    %c0_4 = arith.constant 0 : index
    %c0_5 = arith.constant 0 : index
    %7 = vector.load %arg5[%c0_4, %c0_5] : memref<32x1xf32, #tpu.memory_space<vmem>>, vector<32x1xf32>
    %c0_6 = arith.constant 0 : index
    %c0_7 = arith.constant 0 : index
    %8 = vector.load %arg6[%c0_6, %c0_7] : memref<8x32xf32, #tpu.memory_space<vmem>>, vector<8x32xf32>
    %c0_8 = arith.constant 0 : index
    %c0_9 = arith.constant 0 : index
    %9 = vector.load %arg7[%c0_8, %c0_9] : memref<8x32xf32, #tpu.memory_space<vmem>>, vector<8x32xf32>
    %c0_10 = arith.constant 0 : index
    %c0_11 = arith.constant 0 : index
    %c0_12 = arith.constant 0 : index
    %10 = vector.load %arg2[%c0_10, %c0_11, %c0_12] : memref<1x16x256xf32, #tpu.memory_space<vmem>>, vector<1x16x256xf32>
    %11 = vector.shape_cast %10 : vector<1x16x256xf32> to vector<16x256xf32>
    %c1_i32 = arith.constant 1 : i32
    %12 = tpu.dynamic_rotate %11 by %c1_i32 dim 1 : vector<16x256xf32>, i32 -> vector<16x256xf32>
    %13 = vector.broadcast %2 : vector<1x256xf32> to vector<16x256xf32>
    %14 = arith.mulf %12, %13 : vector<16x256xf32>
    %c255_i32 = arith.constant 255 : i32
    %15 = tpu.dynamic_rotate %11 by %c255_i32 dim 1 : vector<16x256xf32>, i32 -> vector<16x256xf32>
    %16 = vector.broadcast %3 : vector<1x256xf32> to vector<16x256xf32>
    %17 = arith.mulf %15, %16 : vector<16x256xf32>
    %c16_i32 = arith.constant 16 : i32
    %18 = tpu.dynamic_rotate %11 by %c16_i32 dim 1 : vector<16x256xf32>, i32 -> vector<16x256xf32>
    %19 = vector.broadcast %4 : vector<1x256xf32> to vector<16x256xf32>
    %20 = arith.mulf %18, %19 : vector<16x256xf32>
    %c240_i32 = arith.constant 240 : i32
    %21 = tpu.dynamic_rotate %11 by %c240_i32 dim 1 : vector<16x256xf32>, i32 -> vector<16x256xf32>
    %22 = vector.broadcast %5 : vector<1x256xf32> to vector<16x256xf32>
    %23 = arith.mulf %21, %22 : vector<16x256xf32>
    %cst = arith.constant dense<0.000000e+00> : vector<32x256xf32>
    %24 = tpu.matmul %6, %11, %cst {dimension_numbers = #tpu.dot_dimension_numbers<[1], [0], [0], [1], [0, 0, 1, 1], [], []>} : vector<32x16xf32>, vector<16x256xf32>, vector<32x256xf32> -> vector<32x256xf32>
    %25 = vector.broadcast %7 : vector<32x1xf32> to vector<32x256xf32>
    %26 = arith.addf %24, %25 : vector<32x256xf32>
    %27 = tpu.concatenate %14, %17 in 0 : vector<16x256xf32>, vector<16x256xf32> -> vector<32x256xf32>
    %cst_13 = arith.constant dense<0.000000e+00> : vector<8x256xf32>
    %28 = tpu.matmul %8, %27, %cst_13 {dimension_numbers = #tpu.dot_dimension_numbers<[1], [0], [0], [1], [0, 0, 1, 1], [], []>} : vector<8x32xf32>, vector<32x256xf32>, vector<8x256xf32> -> vector<8x256xf32>
    %29 = tpu.concatenate %20, %23 in 0 : vector<16x256xf32>, vector<16x256xf32> -> vector<32x256xf32>
    %cst_14 = arith.constant dense<0.000000e+00> : vector<8x256xf32>
    %30 = tpu.matmul %9, %29, %cst_14 {dimension_numbers = #tpu.dot_dimension_numbers<[1], [0], [0], [1], [0, 0, 1, 1], [], []>} : vector<8x32xf32>, vector<32x256xf32>, vector<8x256xf32> -> vector<8x256xf32>
    %31 = vector.extract_strided_slice %26 {offsets = [0, 0], sizes = [8, 256], strides = [1, 1]} : vector<32x256xf32> to vector<8x256xf32>
    %32 = arith.addf %31, %28 : vector<8x256xf32>
    %cst_15 = arith.constant 0.000000e+00 : f32
    %33 = vector.broadcast %cst_15 : f32 to vector<8x256xf32>
    %34 = arith.maximumf %32, %33 : vector<8x256xf32>
    %35 = vector.extract_strided_slice %26 {offsets = [8, 0], sizes = [8, 256], strides = [1, 1]} : vector<32x256xf32> to vector<8x256xf32>
    %36 = arith.addf %35, %30 : vector<8x256xf32>
    %cst_16 = arith.constant 0.000000e+00 : f32
    %37 = vector.broadcast %cst_16 : f32 to vector<8x256xf32>
    %38 = arith.maximumf %36, %37 : vector<8x256xf32>
    %39 = vector.extract_strided_slice %26 {offsets = [16, 0], sizes = [16, 256], strides = [1, 1]} : vector<32x256xf32> to vector<16x256xf32>
    %cst_17 = arith.constant 0xFF800000 : f32
    %40 = vector.broadcast %cst_17 : f32 to vector<1x256xf32>
    %cst_18 = arith.constant 0.000000e+00 : f32
    %41 = vector.broadcast %cst_18 : f32 to vector<1x256xf32>
    %cst_19 = arith.constant 0.000000e+00 : f32
    %42 = vector.broadcast %cst_19 : f32 to vector<16x256xf32>
    %cst_20 = arith.constant dense<0.000000e+00> : vector<256x256xf32>
    %43 = tpu.matmul %38, %34, %cst_20 {dimension_numbers = #tpu.dot_dimension_numbers<[0], [0], [1], [1], [0, 1, 1, 1], [], []>} : vector<8x256xf32>, vector<8x256xf32>, vector<256x256xf32> -> vector<256x256xf32>
    %cst_21 = arith.constant dense<0xFF800000> : vector<256xf32>
    %44 = vector.multi_reduction <maximumf>, %43, %cst_21 [0] : vector<256x256xf32> to vector<256xf32>
    %45 = vector.shape_cast %44 : vector<256xf32> to vector<1x256xf32>
    %46 = arith.maximumf %40, %45 : vector<1x256xf32>
    %47 = arith.subf %40, %46 : vector<1x256xf32>
    %48 = math.exp %47 : vector<1x256xf32>
    %49 = vector.broadcast %46 : vector<1x256xf32> to vector<256x256xf32>
    %50 = arith.subf %43, %49 : vector<256x256xf32>
    %51 = math.exp %50 : vector<256x256xf32>
    %52 = arith.mulf %48, %41 : vector<1x256xf32>
    %cst_22 = arith.constant dense<0.000000e+00> : vector<256xf32>
    %53 = vector.multi_reduction <add>, %51, %cst_22 [0] : vector<256x256xf32> to vector<256xf32>
    %54 = vector.shape_cast %53 : vector<256xf32> to vector<1x256xf32>
    %55 = arith.addf %52, %54 : vector<1x256xf32>
    %56 = vector.broadcast %48 : vector<1x256xf32> to vector<16x256xf32>
    %57 = arith.mulf %42, %56 : vector<16x256xf32>
    %cst_23 = arith.constant dense<0.000000e+00> : vector<16x256xf32>
    %58 = tpu.matmul %39, %51, %cst_23 {dimension_numbers = #tpu.dot_dimension_numbers<[1], [0], [0], [1], [0, 0, 1, 1], [], []>} : vector<16x256xf32>, vector<256x256xf32>, vector<16x256xf32> -> vector<16x256xf32>
    %59 = arith.addf %57, %58 : vector<16x256xf32>
    %60 = tpu.reciprocal %55 : vector<1x256xf32> -> vector<1x256xf32>
    %61 = vector.broadcast %60 : vector<1x256xf32> to vector<16x256xf32>
    %62 = arith.mulf %59, %61 : vector<16x256xf32>
    %63 = vector.broadcast %0 : f32 to vector<16x256xf32>
    %64 = arith.mulf %63, %62 : vector<16x256xf32>
    %65 = arith.addf %64, %11 : vector<16x256xf32>
    %c0_24 = arith.constant 0 : index
    %c0_25 = arith.constant 0 : index
    %c0_26 = arith.constant 0 : index
    %66 = vector.load %arg8[%c0_24, %c0_25, %c0_26] : memref<1x16x256xf32, #tpu.memory_space<vmem>>, vector<1x16x256xf32>
    %67 = vector.shape_cast %66 : vector<1x16x256xf32> to vector<16x256xf32>
    %68 = vector.shape_cast %65 : vector<16x256xf32> to vector<1x16x256xf32>
    tpu.vector_store %arg8[%c0_24, %c0_25, %c0_26], %68 {strides = array<i32>} : memref<1x16x256xf32, #tpu.memory_space<vmem>>, vector<1x16x256xf32>,
    return
  }
  func.func @transform_0(%arg0: i32) -> i32 {
    %c0_i32 = arith.constant 0 : i32
    %c0_i32_0 = arith.constant 0 : i32
    return %c0_i32 : i32
  }
  func.func @transform_1(%arg0: i32) -> (i32, i32, i32) {
    %c0_i32 = arith.constant 0 : i32
    %c0_i32_0 = arith.constant 0 : i32
    %c0_i32_1 = arith.constant 0 : i32
    return %arg0, %c0_i32, %c0_i32_0 : i32, i32, i32
  }
  func.func @transform_2(%arg0: i32) -> (i32, i32) {
    %c0_i32 = arith.constant 0 : i32
    %c0_i32_0 = arith.constant 0 : i32
    %c0_i32_1 = arith.constant 0 : i32
    return %c0_i32, %c0_i32_0 : i32, i32
  }
  func.func @transform_3(%arg0: i32) -> (i32, i32) {
    %c0_i32 = arith.constant 0 : i32
    %c0_i32_0 = arith.constant 0 : i32
    %c0_i32_1 = arith.constant 0 : i32
    return %c0_i32, %c0_i32_0 : i32, i32
  }
  func.func @transform_4(%arg0: i32) -> (i32, i32) {
    %c0_i32 = arith.constant 0 : i32
    %c0_i32_0 = arith.constant 0 : i32
    %c0_i32_1 = arith.constant 0 : i32
    return %c0_i32, %c0_i32_0 : i32, i32
  }
  func.func @transform_5(%arg0: i32) -> (i32, i32) {
    %c0_i32 = arith.constant 0 : i32
    %c0_i32_0 = arith.constant 0 : i32
    %c0_i32_1 = arith.constant 0 : i32
    return %c0_i32, %c0_i32_0 : i32, i32
  }
  func.func @transform_6(%arg0: i32) -> (i32, i32) {
    %c0_i32 = arith.constant 0 : i32
    %c0_i32_0 = arith.constant 0 : i32
    %c0_i32_1 = arith.constant 0 : i32
    return %c0_i32, %c0_i32_0 : i32, i32
  }
  func.func @transform_7(%arg0: i32) -> (i32, i32, i32) {
    %c0_i32 = arith.constant 0 : i32
    %c0_i32_0 = arith.constant 0 : i32
    %c0_i32_1 = arith.constant 0 : i32
    return %arg0, %c0_i32, %c0_i32_0 : i32, i32, i32
  }
}

</mosaic_0001>

<bundles_post_ra>
// kernel: spatial_attention_block.1
= control target key start
LH: loop header
LB: loop body
LE: loop exit
PB: predicated region body
PF: predicated region fallthrough
CT: control target
= control target key end

     0   :  { %s1997_s26 = smov 0   ;;  %s2820_s0 = inlined_call_operand.<no memory space> [shape: f32[1], index: 0, kind: input, shape index: {}]   ;;  %s2821_s1 = inlined_call_operand.vmem [shape: f32[2,16,256], index: 1, kind: input, shape index: {}]   ;;  %s2822_s2 = inlined_call_operand.vmem [shape: f32[4,256], index: 2, kind: input, shape index: {}]   ;;  %s2823_s3 = inlined_call_operand.vmem [shape: f32[32,16], index: 3, kind: input, shape index: {}]   ;;  %s2824_s4 = inlined_call_operand.vmem [shape: f32[32,1], index: 4, kind: input, shape index: {}]   ;;  %s2825_s5 = inlined_call_operand.vmem [shape: f32[8,32], index: 5, kind: input, shape index: {}]   ;;  %s2826_s6 = inlined_call_operand.vmem [shape: f32[8,32], index: 6, kind: input, shape index: {}]   ;;  %s2827_s7 = inlined_call_operand.vmem [shape: f32[2,16,256], index: 7, kind: output, shape index: {}]  }
   0x1   :  { %12 = sst [smem:[#allocation4]] %s2820_s0 }
   0x2 LB: > { %s1641_s27 = sadd.s32 4294967295, %s1946_s26   ;;  %p1645_p0 = scmp.ge.s32.totalorder %s1946_s26, 1  ;;  %s1946_s26 = sphi %s1997_s26, %s18_s26  }
   0x3   : > { %p238_p1 = scmp.lt.s32.totalorder %s1946_s26, 3 }
   0x5   : > { %p239_p2 = pnand %p1645_p0, %p238_p1 }
   0x7   : > { %242 = sbr.rel (%p239_p2) target bundleno = 1216 (0x4c0), region = 48 }
   0xe   : > { %p270_p3 = scmp.lt.s32.totalorder %s1641_s27, 1  ;;  %v1948_v0 = vmov 0.0   ;;  %s1949_s8 = smov 1   ;;  %v282_v7 = vld [vmem:[%s2823_s3] sm:$0xff]  ;;  %vm459_vm0 = vcmask 130048   ;;  %v283_v8 = vld [vmem:[%s2823_s3 + $0x8] sm:$0xff]  ;;  %v304_v14 = vlaneseq }
   0xf   : > { %536 = vmatprep.mubr.f32.mxu0 %v1948_v0  ;;  %943 = vmatprep.mubr.f32.mxu1 %v1948_v0  ;;  %s1950_s13 = smov 127   ;;  %v284_v9 = vld [vmem:[%s2823_s3 + $0x10] sm:$0xff]  ;;  %v285_v10 = vld [vmem:[%s2823_s3 + $0x18] sm:$0xff]  ;;  %s1951_s18 = smov 16   ;;  %v1953_v11 = vmov 0   ;;  %v286_v12 = vld [vmem:[%s2824_s4] sm:$0xff] }
  0x10   : > { %s2982_s27 = smov (!%p270_p3, %s1641_s27), 1  ;;  %s1952_s19 = smov 112   ;;  %1799 = vset.pattern.permute.xlu1 %v1953_v11  ;;  %1798 = vset.pattern.permute.xlu0 %v1953_v11  ;;  %v287_v13 = vld [vmem:[%s2824_s4 + $0x8] sm:$0xff]  ;;  %v2047_v15 = vshrl.u32 %v304_v14, 7  ;;  %v2054_v18 = vld [vmem:[%s2822_s2] sm:$0xff]  ;;  %v2056_v19 = vand.u32 127, %v304_v14 }
  0x11   : > { %s1690_s0 = sshll.u32 %s2982_s27, 5  ;;  %vm561_vm4 = vcmask 261120   ;;  %vm782_vm6 = vcmask 64512   ;;  %s280_s14 = sld [smem:[#allocation4]] }
  0x12   : > { %s2015_s30 = scalar_lea.vmem %s2821_s1, %s1690_s0  ;;  %v314_v16 = vsub.s32 0, %v2047_v15  ;;  %v318_v17 = vsub.s32 4, %v2047_v15  ;;  %vm306_vm1 = vcmp.lt.s32.totalorder %v2056_v19, 1  ;;  %v349_v24 = vsub.s32 1, %v2047_v15  ;;  %s279_s17 = scalar_lea.vmem %s2827_s7, %s1690_s0 }
  0x13   : > { %v293_v1 = vld [vmem:[%s2015_s30 + $0x8] sm:$0xff]  ;;  %v292_v2 = vld [vmem:[%s2015_s30] sm:$0xff]  ;;  %v295_v3 = vld [vmem:[%s2015_s30 + $0x18] sm:$0xff]  ;;  %v353_v25 = vsub.s32 5, %v2047_v15  ;;  %v384_v44 = vsub.s32 2, %v2047_v15  ;;  %v388_v45 = vsub.s32 6, %v2047_v15 }
  0x14   : > { %300 = vrot.lane.b32.xlu1 %v293_v1, %s1949_s8  ;;  %296 = vrot.lane.b32.xlu0 %v292_v2, %s1949_s8  ;;  %v294_v4 = vld [vmem:[%s2015_s30 + $0x10] sm:$0xff]  ;;  %v1692_v5 = vpack.c.bf16 %v295_v3, %v293_v1  ;;  %v315_v20 = vrot.slane %v2054_v18, %v314_v16  ;;  %v319_v21 = vrot.slane %v2054_v18, %v318_v17  ;;  %vm342_vm2 = vcmp.lt.s32.totalorder %v2056_v19, 127 }
  0x15   : > { %v1694_v6 = vpack.c.bf16 %v294_v4, %v292_v2  ;;  %v350_v34 = vrot.slane %v2054_v18, %v349_v24  ;;  %v354_v35 = vrot.slane %v2054_v18, %v353_v25  ;;  %v385_v50 = vrot.slane %v2054_v18, %v384_v44 }
  0x16   : > { %1693 = vmatprep.subr.bf16.mxu0 %v1692_v5  ;;  %v325_v26 = vrot.slane %v315_v20, %v314_v16  ;;  %v329_v27 = vrot.slane %v319_v21, %v314_v16  ;;  %v389_v51 = vrot.slane %v2054_v18, %v388_v45  ;;  %vm377_vm3 = vcmp.lt.s32.totalorder %v2056_v19, 16  ;;  %v290_v5 = vld [vmem:[%s2825_s5] sm:$0xff] }
  0x17   : > { %1695 = vmatpush1.bf16.msra.mxu0 %v1694_v6  ;;  %v360_v46 = vrot.slane %v350_v34, %v349_v24  ;;  %v364_v47 = vrot.slane %v354_v35, %v349_v24  ;;  %vm412_vm5 = vcmp.lt.s32.totalorder %v2056_v19, 112  ;;  %v291_v19 = vld [vmem:[%s2826_s6] sm:$0xff] }
  0x18   : > { %302 = vrot.lane.b32.xlu1 %v295_v3, %s1949_s8  ;;  %298 = vrot.lane.b32.xlu0 %v294_v4, %s1949_s8 }
  0x1a   : > { %1650 = vmatmul.mubr.msk.f32.vlgmr.msra.gmra.mrb[0].mxu0 %vm459_vm0, %v282_v7 }
  0x1b   : > { %542 = vmatprep.mubr.f32.mxu0 %v1948_v0 }
  0x1c   : > { %336 = vrot.lane.b32.xlu1 %v294_v4, %s1950_s13  ;;  %334 = vrot.lane.b32.xlu0 %v292_v2, %s1950_s13 }
  0x1e   : > { %1651 = vmatmul.mubr.msk.f32.gmra.mrb[2].mxu0 %vm459_vm0, %v283_v8 }
  0x1f   : > { %548 = vmatprep.mubr.f32.mxu0 %v1948_v0 }
  0x20   : > { %340 = vrot.lane.b32.xlu1 %v295_v3, %s1950_s13  ;;  %338 = vrot.lane.b32.xlu0 %v293_v1, %s1950_s13 }
  0x22   : > { %1652 = vmatmul.mubr.msk.f32.gmra.mrb[4].mxu0 %vm459_vm0, %v284_v9 }
  0x23   : > { %554 = vmatprep.mubr.f32.mxu0 %v1948_v0 }
  0x24   : > { %371 = vrot.lane.b32.xlu1 %v294_v4, %s1951_s18  ;;  %369 = vrot.lane.b32.xlu0 %v292_v2, %s1951_s18 }
  0x26   : > { %1653 = vmatmul.mubr.msk.f32.gmra.mrb[6].mxu0 %vm459_vm0, %v285_v10 }
  0x27   : > { %629 = vmatprep.mubr.f32.mxu0 %v1948_v0 }
  0x28   : > { %375 = vrot.lane.b32.xlu1 %v295_v3, %s1951_s18  ;;  %373 = vrot.lane.b32.xlu0 %v293_v1, %s1951_s18 }
  0x2c   : > { %406 = vrot.lane.b32.xlu1 %v294_v4, %s1952_s19  ;;  %404 = vrot.lane.b32.xlu0 %v292_v2, %s1952_s19  ;;  %v423_v2 = vsub.s32 7, %v2047_v15  ;;  %v399_v4 = vrot.slane %v389_v51, %v384_v44 }
  0x2e   : > { %v424_v9 = vrot.slane %v2054_v18, %v423_v2 }
  0x30   : > { %410 = vrot.lane.b32.xlu1 %v295_v3, %s1952_s19  ;;  %408 = vrot.lane.b32.xlu0 %v293_v1, %s1952_s19  ;;  %v419_v1 = vsub.s32 3, %v2047_v15  ;;  %v395_v3 = vrot.slane %v385_v50, %v384_v44 }
  0x32   : > { %v420_v8 = vrot.slane %v2054_v18, %v419_v1  ;;  %v434_v24 = vrot.slane %v424_v9, %v419_v1 }
  0x34   : > { %441 = vperm.xlu1 %1799, %v286_v12   ;;  %446 = vperm.xlu0 %1798, %v287_v13   ;;  %v430_v18 = vrot.slane %v420_v8, %v419_v1 }
  0x86   : > { %v301_v22 = vpop.permute.xlu1 %300  ;;  %v297_v23 = vpop.permute.xlu0 %296 }
  0x87   : > { %v307_v28 = vsel %vm306_vm1, %v297_v23, %v301_v22  ;;  %v309_v29 = vsel %vm306_vm1, %v301_v22, %v297_v23 }
  0x88   : > { %v330_v36 = vmul.f32 %v325_v26, %v309_v29  ;;  %v331_v37 = vmul.f32 %v329_v27, %v307_v28 }
  0x8a   : > { %v303_v30 = vpop.permute.xlu1 %302  ;;  %v299_v31 = vpop.permute.xlu0 %298 }
  0x8b   : > { %v308_v32 = vsel %vm306_vm1, %v299_v31, %v303_v30  ;;  %v310_v33 = vsel %vm306_vm1, %v303_v30, %v299_v31 }
  0x8c   : > { %v332_v38 = vmul.f32 %v325_v26, %v310_v33  ;;  %v333_v39 = vmul.f32 %v329_v27, %v308_v32 }
  0x8e   : > { %v1698_v40 = vpack.c.bf16 %v332_v38, %v330_v36  ;;  %v337_v41 = vpop.permute.xlu1 %336  ;;  %v335_v42 = vpop.permute.xlu0 %334  ;;  %v1696_v43 = vpack.c.bf16 %v333_v39, %v331_v37 }
  0x90   : > { %1697 = vmatprep.subr.bf16.mxu0 %v1696_v43 }
  0x91   : > { %1699 = vmatpush1.bf16.msra.mxu0 %v1698_v40 }
  0x92   : > { %v341_v48 = vpop.permute.xlu1 %340  ;;  %v339_v49 = vpop.permute.xlu0 %338 }
  0x93   : > { %v344_v52 = vsel %vm342_vm2, %v337_v41, %v341_v48  ;;  %v346_v53 = vsel %vm342_vm2, %v341_v48, %v337_v41  ;;  %v343_v54 = vsel %vm342_vm2, %v335_v42, %v339_v49  ;;  %v345_v55 = vsel %vm342_vm2, %v339_v49, %v335_v42 }
  0x94   : > { %v367_v56 = vmul.f32 %v360_v46, %v344_v52  ;;  %v368_v57 = vmul.f32 %v364_v47, %v346_v53  ;;  %v365_v58 = vmul.f32 %v360_v46, %v343_v54  ;;  %v366_v59 = vmul.f32 %v364_v47, %v345_v55  ;;  %v289_v55 = vld [vmem:[%s2824_s4 + $0x18] sm:$0xff] }
  0x96   : > { %v1702_v60 = vpack.c.bf16 %v367_v56, %v365_v58  ;;  %v372_v61 = vpop.permute.xlu1 %371  ;;  %v370_v62 = vpop.permute.xlu0 %369  ;;  %v1700_v63 = vpack.c.bf16 %v368_v57, %v366_v59  ;;  %v288_v56 = vld [vmem:[%s2824_s4 + $0x10] sm:$0xff] }
  0x98   : > { %1701 = vmatprep.subr.bf16.mxu0 %v1700_v63 }
  0x99   : > { %1703 = vmatpush1.bf16.msra.mxu0 %v1702_v60 }
  0x9a   : > { %v376_v6 = vpop.permute.xlu1 %375  ;;  %v374_v7 = vpop.permute.xlu0 %373 }
  0x9b   : > { %v379_v10 = vsel %vm377_vm3, %v372_v61, %v376_v6  ;;  %v381_v11 = vsel %vm377_vm3, %v376_v6, %v372_v61  ;;  %v378_v12 = vsel %vm377_vm3, %v370_v62, %v374_v7  ;;  %v380_v13 = vsel %vm377_vm3, %v374_v7, %v370_v62 }
  0x9c   : > { %v402_v14 = vmul.f32 %v395_v3, %v381_v11  ;;  %v403_v15 = vmul.f32 %v399_v4, %v379_v10  ;;  %v400_v16 = vmul.f32 %v395_v3, %v380_v13  ;;  %v401_v17 = vmul.f32 %v399_v4, %v378_v12  ;;  %1654 = vmatmul.mubr.msk.f32.vlgmr.msra.gmra.mrb[0].mxu0 %vm561_vm4, %v290_v5 }
  0x9d   : > { %703 = vmatprep.mubr.f32.mxu0 %v1948_v0 }
  0x9e   : > { %v1706_v20 = vpack.c.bf16 %v402_v14, %v400_v16  ;;  %v407_v21 = vpop.permute.xlu1 %406  ;;  %v405_v22 = vpop.permute.xlu0 %404  ;;  %v1704_v23 = vpack.c.bf16 %v403_v15, %v401_v17 }
  0xa0   : > { %1705 = vmatprep.subr.bf16.mxu0 %v1704_v23 }
  0xa1   : > { %1707 = vmatpush1.bf16.msra.mxu0 %v1706_v20 }
  0xa2   : > { %v411_v25 = vpop.permute.xlu1 %410  ;;  %v409_v26 = vpop.permute.xlu0 %408 }
  0xa3   : > { %v414_v27 = vsel %vm412_vm5, %v407_v21, %v411_v25  ;;  %v416_v28 = vsel %vm412_vm5, %v411_v25, %v407_v21  ;;  %v413_v29 = vsel %vm412_vm5, %v405_v22, %v409_v26  ;;  %v415_v30 = vsel %vm412_vm5, %v409_v26, %v405_v22 }
  0xa4   : > { %v437_v31 = vmul.f32 %v430_v18, %v414_v27  ;;  %v438_v32 = vmul.f32 %v434_v24, %v416_v28  ;;  %v435_v33 = vmul.f32 %v430_v18, %v413_v29  ;;  %v436_v34 = vmul.f32 %v434_v24, %v415_v30 }
  0xa6   : > { %v1710_v35 = vpack.c.bf16 %v437_v31, %v435_v33  ;;  %v1708_v36 = vpack.c.bf16 %v438_v32, %v436_v34 }
  0xa8   : > { %1709 = vmatprep.subr.bf16.mxu0 %v1708_v36 }
  0xa9   : > { %1711 = vmatpush1.bf16.msra.mxu0 %v1710_v35 }
  0xac   : > { %1655 = vmatmul.mubr.msk.f32.vlgmr.msra.gmra.mrb[2].mxu0 %vm561_vm4, %v291_v19 }
  0xb3   : > { %v442_v41 = vpop.permute.xlu1 %441  ;;  %v447_v48 = vpop.permute.xlu0 %446 }
  0xf5   : > { %v2085_v37 = vpop.f32.mrb[4].mxu0 }
  0xf6   : > { %v2087_v38 = vpop.f32.mrb[5].mxu0 }
  0xf9   : > { %v2089_v39 = vpop.f32.mrb[6].mxu0 }
  0xfa   : > { %2871 = vst [vmem:[#allocation5_spill] sm:$0xff] %v2089_v39  ;;  %v2091_v40 = vpop.f32.mrb[7].mxu0 }
  0xfb   : > { %2872 = vst [vmem:[#allocation6_spill] sm:$0xff] %v2091_v40 }
 0x16f   : > { %v631_v42 = vpop.f32.mrb[0].mxu0 }
 0x170   : > { %v1776_v43 = vadd.f32 %v631_v42, %v442_v41  ;;  %v633_v44 = vpop.f32.mrb[1].mxu0 }
 0x171   : > { %v1777_v45 = vadd.f32 %v633_v44, %v442_v41 }
 0x172   : > { %v712_v47 = vmax.f32 %v1776_v43, 0.0 }
 0x173   : > { %v713_v46 = vmax.f32 %v1777_v45, 0.0 }
 0x175   : > { %879 = vmatprep.subr.mxu1 %v713_v46 }
 0x176   : > { %880 = vmatpush1.msra.mxu1 %v712_v47 }
 0x17f   : > { %v705_v49 = vpop.f32.mrb[2].mxu0 }
 0x180   : > { %v1778_v50 = vadd.f32 %v705_v49, %v447_v48  ;;  %v707_v51 = vpop.f32.mrb[3].mxu0 }
 0x181   : > { %v1779_v52 = vadd.f32 %v707_v51, %v447_v48 }
 0x182   : > { %v716_v53 = vmax.f32 %v1778_v50, 0.0 }
 0x183   : > { %v717_v54 = vmax.f32 %v1779_v52, 0.0 }
 0x184   : > { %718 = vxpose.xlu1.b32.start.end [1/1] (short) %v716_v53, 128 }
 0x185   : > { %750 = vxpose.xlu0.b32.start.end [1/1] (short) %v717_v54, 128 }
 0x1de   : > { %456 = vperm.xlu1 %1799, %v289_v55  }
 0x1ea   : > { %451 = vperm.xlu0 %1798, %v288_v56  }
 0x204   : > { %v734_v57 = vpop.trf.xlu1 }
 0x205   : > { %1656 = vmatmul.mubr.msk.f32.vlgmr.msra.gmra.mrb[0].mxu1 %vm782_vm6, %v734_v57  ;;  %v766_v59 = vpop.trf.xlu0 }
 0x206   : > { %949 = vmatprep.mubr.f32.mxu1 %v1948_v0 }
 0x208   : > { %v735_v58 = vpop.trf.xlu1 }
 0x209   : > { %1657 = vmatmul.mubr.msk.f32.gmra.mrb[2].mxu1 %vm782_vm6, %v735_v58  ;;  %v767_v61 = vpop.trf.xlu0 }
 0x20a   : > { %955 = vmatprep.mubr.f32.mxu1 %v1948_v0 }
 0x20c   : > { %v736_v60 = vpop.trf.xlu1 }
 0x20d   : > { %1658 = vmatmul.mubr.msk.f32.gmra.mrb[4].mxu1 %vm782_vm6, %v736_v60  ;;  %v768_v1 = vpop.trf.xlu0 }
 0x20e   : > { %961 = vmatprep.mubr.f32.mxu1 %v1948_v0 }
 0x210   : > { %v737_v62 = vpop.trf.xlu1 }
 0x211   : > { %1659 = vmatmul.mubr.msk.f32.gmra.mrb[6].mxu1 %vm782_vm6, %v737_v62  ;;  %v769_v3 = vpop.trf.xlu0 }
 0x212   : > { %967 = vmatprep.mubr.f32.mxu1 %v1948_v0 }
 0x214   : > { %v738_v63 = vpop.trf.xlu1 }
 0x215   : > { %1660 = vmatmul.mubr.msk.f32.gmra.mrb[8].mxu1 %vm782_vm6, %v738_v63  ;;  %v770_v6 = vpop.trf.xlu0 }
 0x216   : > { %973 = vmatprep.mubr.f32.mxu1 %v1948_v0 }
 0x218   : > { %v739_v2 = vpop.trf.xlu1 }
 0x219   : > { %1661 = vmatmul.mubr.msk.f32.gmra.mrb[10].mxu1 %vm782_vm6, %v739_v2  ;;  %v771_v8 = vpop.trf.xlu0 }
 0x21a   : > { %979 = vmatprep.mubr.f32.mxu1 %v1948_v0 }
 0x21c   : > { %v740_v4 = vpop.trf.xlu1 }
 0x21d   : > { %1662 = vmatmul.mubr.msk.f32.gmra.mrb[12].mxu1 %vm782_vm6, %v740_v4  ;;  %v772_v11 = vpop.trf.xlu0 }
 0x21e   : > { %985 = vmatprep.mubr.f32.mxu1 %v1948_v0 }
 0x220   : > { %v741_v5 = vpop.trf.xlu1 }
 0x221   : > { %1663 = vmatmul.mubr.msk.f32.gmra.mrb[14].mxu1 %vm782_vm6, %v741_v5  ;;  %v773_v13 = vpop.trf.xlu0 }
 0x222   : > { %991 = vmatprep.mubr.f32.mxu1 %v1948_v0 }
 0x224   : > { %v742_v7 = vpop.trf.xlu1 }
 0x225   : > { %1664 = vmatmul.mubr.msk.f32.gmra.mrb[16].mxu1 %vm782_vm6, %v742_v7  ;;  %v774_v16 = vpop.trf.xlu0 }
 0x226   : > { %997 = vmatprep.mubr.f32.mxu1 %v1948_v0 }
 0x228   : > { %v743_v9 = vpop.trf.xlu1 }
 0x229   : > { %1665 = vmatmul.mubr.msk.f32.gmra.mrb[18].mxu1 %vm782_vm6, %v743_v9  ;;  %v775_v20 = vpop.trf.xlu0 }
 0x22a   : > { %1003 = vmatprep.mubr.f32.mxu1 %v1948_v0 }
 0x22c   : > { %v744_v10 = vpop.trf.xlu1 }
 0x22d   : > { %1666 = vmatmul.mubr.msk.f32.gmra.mrb[20].mxu1 %vm782_vm6, %v744_v10  ;;  %v776_v22 = vpop.trf.xlu0 }
 0x22e   : > { %1009 = vmatprep.mubr.f32.mxu1 %v1948_v0 }
 0x230   : > { %v745_v12 = vpop.trf.xlu1 }
 0x231   : > { %1667 = vmatmul.mubr.msk.f32.gmra.mrb[22].mxu1 %vm782_vm6, %v745_v12  ;;  %v777_v23 = vpop.trf.xlu0 }
 0x232   : > { %1015 = vmatprep.mubr.f32.mxu1 %v1948_v0 }
 0x234   : > { %v746_v14 = vpop.trf.xlu1 }
 0x235   : > { %1668 = vmatmul.mubr.msk.f32.gmra.mrb[24].mxu1 %vm782_vm6, %v746_v14  ;;  %v778_v18 = vpop.trf.xlu0 }
 0x236   : > { %1021 = vmatprep.mubr.f32.mxu1 %v1948_v0 }
 0x238   : > { %v747_v15 = vpop.trf.xlu1 }
 0x239   : > { %1669 = vmatmul.mubr.msk.f32.gmra.mrb[26].mxu1 %vm782_vm6, %v747_v15  ;;  %v779_v24 = vpop.trf.xlu0 }
 0x23a   : > { %1027 = vmatprep.mubr.f32.mxu1 %v1948_v0 }
 0x23c   : > { %v748_v17 = vpop.trf.xlu1 }
 0x23d   : > { %1670 = vmatmul.mubr.msk.f32.gmra.mrb[28].mxu1 %vm782_vm6, %v748_v17  ;;  %v780_v25 = vpop.trf.xlu0 }
 0x23e   : > { %1033 = vmatprep.mubr.f32.mxu1 %v1948_v0 }
 0x240   : > { %v749_v21 = vpop.trf.xlu1 }
 0x241   : > { %1671 = vmatmul.mubr.msk.f32.gmra.mrb[30].mxu1 %vm782_vm6, %v749_v21  ;;  %v781_v26 = vpop.trf.xlu0 }
 0x242   : > { %1039 = vmatprep.mubr.f32.mxu1 %v1948_v0 }
 0x245   : > { %1672 = vmatmul.mubr.msk.f32.gmra.mrb[32].mxu1 %vm782_vm6, %v766_v59 }
 0x246   : > { %1045 = vmatprep.mubr.f32.mxu1 %v1948_v0 }
 0x249   : > { %1673 = vmatmul.mubr.msk.f32.gmra.mrb[34].mxu1 %vm782_vm6, %v767_v61 }
 0x24a   : > { %1051 = vmatprep.mubr.f32.mxu1 %v1948_v0 }
 0x24d   : > { %1674 = vmatmul.mubr.msk.f32.gmra.mrb[36].mxu1 %vm782_vm6, %v768_v1 }
 0x24e   : > { %1057 = vmatprep.mubr.f32.mxu1 %v1948_v0 }
 0x251   : > { %1675 = vmatmul.mubr.msk.f32.gmra.mrb[38].mxu1 %vm782_vm6, %v769_v3 }
 0x252   : > { %1063 = vmatprep.mubr.f32.mxu1 %v1948_v0 }
 0x255   : > { %1676 = vmatmul.mubr.msk.f32.gmra.mrb[40].mxu1 %vm782_vm6, %v770_v6 }
 0x256   : > { %1069 = vmatprep.mubr.f32.mxu1 %v1948_v0 }
 0x259   : > { %1677 = vmatmul.mubr.msk.f32.gmra.mrb[42].mxu1 %vm782_vm6, %v771_v8 }
 0x25a   : > { %1075 = vmatprep.mubr.f32.mxu1 %v1948_v0 }
 0x25d   : > { %1678 = vmatmul.mubr.msk.f32.gmra.mrb[44].mxu1 %vm782_vm6, %v772_v11 }
 0x25e   : > { %1081 = vmatprep.mubr.f32.mxu1 %v1948_v0 }
 0x261   : > { %1679 = vmatmul.mubr.msk.f32.gmra.mrb[46].mxu1 %vm782_vm6, %v773_v13 }
 0x262   : > { %1087 = vmatprep.mubr.f32.mxu1 %v1948_v0 }
 0x265   : > { %1680 = vmatmul.mubr.msk.f32.gmra.mrb[48].mxu1 %vm782_vm6, %v774_v16 }
 0x266   : > { %1093 = vmatprep.mubr.f32.mxu1 %v1948_v0 }
 0x269   : > { %1681 = vmatmul.mubr.msk.f32.gmra.mrb[50].mxu1 %vm782_vm6, %v775_v20  ;;  %v452_v27 = vpop.permute.xlu0 %451 }
 0x26a   : > { %v2151_v28 = vadd.f32 %v2085_v37, %v452_v27  ;;  %v553_v29 = vadd.f32 %v2087_v38, %v452_v27  ;;  %1099 = vmatprep.mubr.f32.mxu1 %v1948_v0 }
 0x26c   : > { %2873 = vst [vmem:[#allocation7_spill] sm:$0xff] %v2151_v28  ;;  %1550 = vmatprep.mubr.f32.mxu0 %v553_v29 }
 0x26d   : > { %1682 = vmatmul.mubr.msk.f32.gmra.mrb[52].mxu1 %vm782_vm6, %v776_v22 }
 0x26e   : > { %1105 = vmatprep.mubr.f32.mxu1 %v1948_v0 }
 0x271   : > { %1683 = vmatmul.mubr.msk.f32.gmra.mrb[54].mxu1 %vm782_vm6, %v777_v23 }
 0x272   : > { %1111 = vmatprep.mubr.f32.mxu1 %v1948_v0 }
 0x275   : > { %1684 = vmatmul.mubr.msk.f32.gmra.mrb[56].mxu1 %vm782_vm6, %v778_v18 }
 0x276   : > { %1117 = vmatprep.mubr.f32.mxu1 %v1948_v0 }
 0x279   : > { %1685 = vmatmul.mubr.msk.f32.gmra.mrb[58].mxu1 %vm782_vm6, %v779_v24 }
 0x27a   : > { %1123 = vmatprep.mubr.f32.mxu1 %v1948_v0 }
 0x27d   : > { %1686 = vmatmul.mubr.msk.f32.gmra.mrb[60].mxu1 %vm782_vm6, %v780_v25 }
 0x27e   : > { %1129 = vmatprep.mubr.f32.mxu1 %v1948_v0 }
 0x281   : > { %1687 = vmatmul.mubr.msk.f32.gmra.mrb[62].mxu1 %vm782_vm6, %v781_v26 }
 0x2d8   : > { %v2166_v30 = vpop.f32.mrb[0].mxu1 }
 0x2d9   : > { %v2168_v31 = vpop.f32.mrb[1].mxu1 }
 0x2dc   : > { %v2170_v32 = vpop.f32.mrb[2].mxu1 }
 0x2dd   : > { %v2172_v33 = vpop.f32.mrb[3].mxu1 }
 0x2e0   : > { %v2174_v34 = vpop.f32.mrb[4].mxu1 }
 0x2e1   : > { %v1136_v35 = vmax.f32 %v2166_v30, %v2174_v34  ;;  %v2178_v36 = vpop.f32.mrb[5].mxu1 }
 0x2e2   : > { %v1173_v0 = vmax.f32 %v2168_v31, %v2178_v36 }
 0x2e4   : > { %v2182_v19 = vpop.f32.mrb[6].mxu1 }
 0x2e5   : > { %v1137_v37 = vmax.f32 %v2170_v32, %v2182_v19  ;;  %v2186_v38 = vpop.f32.mrb[7].mxu1 }
 0x2e6   : > { %v1174_v41 = vmax.f32 %v2172_v33, %v2186_v38 }
 0x2e8   : > { %v2190_v42 = vpop.f32.mrb[8].mxu1 }
 0x2e9   : > { %v1138_v43 = vmax.f32 %v1136_v35, %v2190_v42  ;;  %v2193_v44 = vpop.f32.mrb[9].mxu1 }
 0x2ea   : > { %v1175_v45 = vmax.f32 %v1173_v0, %v2193_v44 }
 0x2ec   : > { %v2196_v46 = vpop.f32.mrb[10].mxu1 }
 0x2ed   : > { %v1139_v47 = vmax.f32 %v1137_v37, %v2196_v46  ;;  %v2199_v48 = vpop.f32.mrb[11].mxu1 }
 0x2ee   : > { %v1176_v49 = vmax.f32 %v1174_v41, %v2199_v48 }
 0x2f0   : > { %v2202_v50 = vpop.f32.mrb[12].mxu1 }
 0x2f1   : > { %v1140_v51 = vmax.f32 %v1138_v43, %v2202_v50  ;;  %v2205_v52 = vpop.f32.mrb[13].mxu1 }
 0x2f2   : > { %v1177_v53 = vmax.f32 %v1175_v45, %v2205_v52 }
 0x2f4   : > { %v2208_v54 = vpop.f32.mrb[14].mxu1 }
 0x2f5   : > { %v1141_v55 = vmax.f32 %v1139_v47, %v2208_v54  ;;  %v2211_v56 = vpop.f32.mrb[15].mxu1 }
 0x2f6   : > { %v1178_v57 = vmax.f32 %v1176_v49, %v2211_v56 }
 0x2f8   : > { %v2214_v58 = vpop.f32.mrb[16].mxu1 }
 0x2f9   : > { %v1142_v59 = vmax.f32 %v1140_v51, %v2214_v58  ;;  %v2217_v60 = vpop.f32.mrb[17].mxu1 }
 0x2fa   : > { %v1179_v61 = vmax.f32 %v1177_v53, %v2217_v60 }
 0x2fc   : > { %v2220_v62 = vpop.f32.mrb[18].mxu1 }
 0x2fd   : > { %v1143_v63 = vmax.f32 %v1141_v55, %v2220_v62  ;;  %v2223_v1 = vpop.f32.mrb[19].mxu1 }
 0x2fe   : > { %v1180_v2 = vmax.f32 %v1178_v57, %v2223_v1 }
 0x300   : > { %v2226_v3 = vpop.f32.mrb[20].mxu1 }
 0x301   : > { %v1144_v4 = vmax.f32 %v1142_v59, %v2226_v3  ;;  %v2229_v5 = vpop.f32.mrb[21].mxu1 }
 0x302   : > { %v1181_v6 = vmax.f32 %v1179_v61, %v2229_v5 }
 0x304   : > { %v2232_v7 = vpop.f32.mrb[22].mxu1 }
 0x305   : > { %v1145_v8 = vmax.f32 %v1143_v63, %v2232_v7  ;;  %v2235_v9 = vpop.f32.mrb[23].mxu1 }
 0x306   : > { %2874 = vst [vmem:[#allocation8_spill] sm:$0xff] %v2235_v9  ;;  %v1182_v10 = vmax.f32 %v1180_v2, %v2235_v9 }
 0x308   : > { %v2238_v11 = vpop.f32.mrb[24].mxu1 }
 0x309   : > { %v1146_v12 = vmax.f32 %v1144_v4, %v2238_v11  ;;  %v2241_v13 = vpop.f32.mrb[25].mxu1 }
 0x30a   : > { %2875 = vst [vmem:[#allocation9_spill] sm:$0xff] %v2241_v13  ;;  %v1183_v14 = vmax.f32 %v1181_v6, %v2241_v13 }
 0x30c   : > { %v2244_v15 = vpop.f32.mrb[26].mxu1 }
 0x30d   : > { %v1147_v16 = vmax.f32 %v1145_v8, %v2244_v15  ;;  %v2247_v17 = vpop.f32.mrb[27].mxu1 }
 0x30e   : > { %2876 = vst [vmem:[#allocation10_spill] sm:$0xff] %v2247_v17  ;;  %v1184_v20 = vmax.f32 %v1182_v10, %v2247_v17 }
 0x310   : > { %v2250_v21 = vpop.f32.mrb[28].mxu1 }
 0x311   : > { %v1148_v22 = vmax.f32 %v1146_v12, %v2250_v21  ;;  %v2253_v23 = vpop.f32.mrb[29].mxu1 }
 0x312   : > { %2877 = vst [vmem:[#allocation11_spill] sm:$0xff] %v2253_v23  ;;  %v1185_v18 = vmax.f32 %v1183_v14, %v2253_v23 }
 0x314   : > { %v2256_v24 = vpop.f32.mrb[30].mxu1 }
 0x315   : > { %v1149_v25 = vmax.f32 %v1147_v16, %v2256_v24  ;;  %v2259_v26 = vpop.f32.mrb[31].mxu1 }
 0x316   : > { %2878 = vst [vmem:[#allocation12_spill] sm:$0xff] %v2259_v26  ;;  %v1186_v27 = vmax.f32 %v1184_v20, %v2259_v26 }
 0x318   : > { %v2262_v29 = vpop.f32.mrb[32].mxu1 }
 0x319   : > { %v1150_v35 = vmax.f32 %v1148_v22, %v2262_v29  ;;  %v2265_v0 = vpop.f32.mrb[33].mxu1 }
 0x31a   : > { %2879 = vst [vmem:[#allocation13_spill] sm:$0xff] %v2265_v0  ;;  %v1187_v37 = vmax.f32 %v1185_v18, %v2265_v0 }
 0x31c   : > { %v2268_v41 = vpop.f32.mrb[34].mxu1 }
 0x31d   : > { %v1151_v43 = vmax.f32 %v1149_v25, %v2268_v41  ;;  %v2271_v45 = vpop.f32.mrb[35].mxu1 }
 0x31e   : > { %2880 = vst [vmem:[#allocation14_spill] sm:$0xff] %v2271_v45  ;;  %v1188_v47 = vmax.f32 %v1186_v27, %v2271_v45 }
 0x320   : > { %v2274_v49 = vpop.f32.mrb[36].mxu1 }
 0x321   : > { %v1152_v51 = vmax.f32 %v1150_v35, %v2274_v49  ;;  %v2277_v53 = vpop.f32.mrb[37].mxu1 }
 0x322   : > { %2881 = vst [vmem:[#allocation15_spill] sm:$0xff] %v2277_v53  ;;  %v1189_v55 = vmax.f32 %v1187_v37, %v2277_v53 }
 0x324   : > { %v2280_v57 = vpop.f32.mrb[38].mxu1 }
 0x325   : > { %v1153_v59 = vmax.f32 %v1151_v43, %v2280_v57  ;;  %v2283_v61 = vpop.f32.mrb[39].mxu1 }
 0x326   : > { %2882 = vst [vmem:[#allocation16_spill] sm:$0xff] %v2283_v61  ;;  %v1190_v63 = vmax.f32 %v1188_v47, %v2283_v61 }
 0x328   : > { %v2286_v2 = vpop.f32.mrb[40].mxu1 }
 0x329   : > { %v1154_v4 = vmax.f32 %v1152_v51, %v2286_v2  ;;  %v2289_v6 = vpop.f32.mrb[41].mxu1 }
 0x32a   : > { %2883 = vst [vmem:[#allocation17_spill] sm:$0xff] %v2289_v6  ;;  %v1191_v8 = vmax.f32 %v1189_v55, %v2289_v6 }
 0x32c   : > { %v2292_v10 = vpop.f32.mrb[42].mxu1 }
 0x32d   : > { %v1155_v12 = vmax.f32 %v1153_v59, %v2292_v10  ;;  %v2295_v14 = vpop.f32.mrb[43].mxu1 }
 0x32e   : > { %2884 = vst [vmem:[#allocation18_spill] sm:$0xff] %v2295_v14  ;;  %v1192_v16 = vmax.f32 %v1190_v63, %v2295_v14 }
 0x330   : > { %v2298_v20 = vpop.f32.mrb[44].mxu1 }
 0x331   : > { %v1156_v22 = vmax.f32 %v1154_v4, %v2298_v20  ;;  %v2301_v18 = vpop.f32.mrb[45].mxu1 }
 0x332   : > { %2885 = vst [vmem:[#allocation19_spill] sm:$0xff] %v2301_v18  ;;  %v1193_v25 = vmax.f32 %v1191_v8, %v2301_v18 }
 0x334   : > { %v2304_v27 = vpop.f32.mrb[46].mxu1 }
 0x335   : > { %v1157_v35 = vmax.f32 %v1155_v12, %v2304_v27  ;;  %v2307_v37 = vpop.f32.mrb[47].mxu1 }
 0x336   : > { %2886 = vst [vmem:[#allocation20_spill] sm:$0xff] %v2307_v37  ;;  %v1194_v43 = vmax.f32 %v1192_v16, %v2307_v37 }
 0x338   : > { %v2310_v47 = vpop.f32.mrb[48].mxu1 }
 0x339   : > { %v1158_v51 = vmax.f32 %v1156_v22, %v2310_v47  ;;  %v2313_v55 = vpop.f32.mrb[49].mxu1 }
 0x33a   : > { %2887 = vst [vmem:[#allocation21_spill] sm:$0xff] %v2313_v55  ;;  %v1195_v59 = vmax.f32 %v1193_v25, %v2313_v55 }
 0x33c   : > { %v2316_v63 = vpop.f32.mrb[50].mxu1 }
 0x33d   : > { %v1159_v4 = vmax.f32 %v1157_v35, %v2316_v63  ;;  %v2319_v8 = vpop.f32.mrb[51].mxu1 }
 0x33e   : > { %2888 = vst [vmem:[#allocation22_spill] sm:$0xff] %v2319_v8  ;;  %v1196_v12 = vmax.f32 %v1194_v43, %v2319_v8 }
 0x340   : > { %v2322_v39 = vpop.f32.mrb[52].mxu1 }
 0x341   : > { %v1160_v16 = vmax.f32 %v1158_v51, %v2322_v39  ;;  %v2325_v28 = vpop.f32.mrb[53].mxu1 }
 0x342   : > { %2889 = vst [vmem:[#allocation23_spill] sm:$0xff] %v2325_v28  ;;  %v1197_v22 = vmax.f32 %v1195_v59, %v2325_v28 }
 0x344   : > { %v2328_v40 = vpop.f32.mrb[54].mxu1 }
 0x345   : > { %v1161_v25 = vmax.f32 %v1159_v4, %v2328_v40  ;;  %v2331_v55 = vpop.f32.mrb[55].mxu1 }
 0x346   : > { %2890 = vst [vmem:[#allocation24_spill] sm:$0xff] %v2331_v55  ;;  %v1198_v35 = vmax.f32 %v1196_v12, %v2331_v55 }
 0x348   : > { %v2334_v37 = vpop.f32.mrb[56].mxu1 }
 0x349   : > { %v1162_v43 = vmax.f32 %v1160_v16, %v2334_v37  ;;  %v2337_v8 = vpop.f32.mrb[57].mxu1 }
 0x34a   : > { %2891 = vst [vmem:[#allocation25_spill] sm:$0xff] %v2337_v8  ;;  %v1199_v51 = vmax.f32 %v1197_v22, %v2337_v8 }
 0x34c   : > { %v2340_v18 = vpop.f32.mrb[58].mxu1 }
 0x34d   : > { %v1163_v59 = vmax.f32 %v1161_v25, %v2340_v18  ;;  %v2343_v28 = vpop.f32.mrb[59].mxu1 }
 0x34e   : > { %2892 = vst [vmem:[#allocation26_spill] sm:$0xff] %v2343_v28  ;;  %v1200_v4 = vmax.f32 %v1198_v35, %v2343_v28 }
 0x350   : > { %v2346_v14 = vpop.f32.mrb[60].mxu1 }
 0x351   : > { %v1164_v12 = vmax.f32 %v1162_v43, %v2346_v14  ;;  %v2349_v55 = vpop.f32.mrb[61].mxu1 }
 0x352   : > { %2893 = vst [vmem:[#allocation27_spill] sm:$0xff] %v2349_v55  ;;  %v1201_v16 = vmax.f32 %v1199_v51, %v2349_v55 }
 0x354   : > { %v2352_v6 = vpop.f32.mrb[62].mxu1 }
 0x355   : > { %v1165_v22 = vmax.f32 %v1163_v59, %v2352_v6  ;;  %v2355_v8 = vpop.f32.mrb[63].mxu1 }
 0x356   : > { %2894 = vst [vmem:[#allocation28_spill] sm:$0xff] %v2355_v8  ;;  %v1202_v25 = vmax.f32 %v1200_v4, %v2355_v8 }
 0x357   : > { %v1166_v61 = vmax.f32 %v1164_v12, %v1165_v22 }
 0x358   : > { %v1203_v53 = vmax.f32 %v1201_v16, %v1202_v25 }
 0x359   : > { %v1167_v45 = vrot.slane %v1166_v61, 4 }
 0x35a   : > { %v1204_v35 = vrot.slane %v1203_v53, 4 }
 0x35b   : > { %v1168_v28 = vmax.f32 %v1166_v61, %v1167_v45 }
 0x35c   : > { %v1205_v0 = vmax.f32 %v1203_v53, %v1204_v35 }
 0x35d   : > { %v1169_v26 = vrot.slane %v1168_v28, 2 }
 0x35e   : > { %v1206_v43 = vrot.slane %v1205_v0, 2 }
 0x35f   : > { %v1170_v23 = vmax.f32 %v1168_v28, %v1169_v26  ;;  %v2915_v26 = vld [vmem:[#allocation27_spill] sm:$0xff] }
 0x360   : > { %v1207_v17 = vmax.f32 %v1205_v0, %v1206_v43 }
 0x361   : > { %v1171_v13 = vrot.slane %v1170_v23, 1 }
 0x362   : > { %v1208_v51 = vrot.slane %v1207_v17, 1 }
 0x363   : > { %v2358_v55 = vmax.f32 %v1170_v23, %v1171_v13 }
 0x364   : > { %v2360_v9 = vmax.f32 %v1207_v17, %v1208_v51 }
 0x365   : > { %2895 = vst [vmem:[#allocation29_spill] sm:$0xff] %v2358_v55  ;;  %v1216_v59 = vsub.f32 %v2166_v30, %v2358_v55  ;;  %v1218_v4 = vsub.f32 %v2170_v32, %v2358_v55  ;;  %v1220_v45 = vsub.f32 %v2174_v34, %v2358_v55  ;;  %v1222_v53 = vsub.f32 %v2182_v19, %v2358_v55 }
 0x366   : > { %v1224_v28 = vsub.f32 %v2190_v42, %v2358_v55  ;;  %v1226_v13 = vsub.f32 %v2196_v46, %v2358_v55  ;;  %v1228_v17 = vsub.f32 %v2202_v50, %v2358_v55  ;;  %v1230_v30 = vsub.f32 %v2208_v54, %v2358_v55 }
 0x367   : > { %v1232_v32 = vsub.f32 %v2214_v58, %v2358_v55  ;;  %v1234_v34 = vsub.f32 %v2220_v62, %v2358_v55  ;;  %v1236_v19 = vsub.f32 %v2226_v3, %v2358_v55  ;;  %v1238_v42 = vsub.f32 %v2232_v7, %v2358_v55 }
 0x368   : > { %v1240_v46 = vsub.f32 %v2238_v11, %v2358_v55  ;;  %v1242_v50 = vsub.f32 %v2244_v15, %v2358_v55  ;;  %v1244_v54 = vsub.f32 %v2250_v21, %v2358_v55  ;;  %v1246_v58 = vsub.f32 %v2256_v24, %v2358_v55 }
 0x369   : > { %v1248_v62 = vsub.f32 %v2262_v29, %v2358_v55  ;;  %v1250_v3 = vsub.f32 %v2268_v41, %v2358_v55  ;;  %v1252_v7 = vsub.f32 %v2274_v49, %v2358_v55  ;;  %v1254_v11 = vsub.f32 %v2280_v57, %v2358_v55 }
 0x36a   : > { %v1256_v15 = vsub.f32 %v2286_v2, %v2358_v55  ;;  %v1258_v21 = vsub.f32 %v2292_v10, %v2358_v55  ;;  %v1260_v23 = vsub.f32 %v2298_v20, %v2358_v55  ;;  %v1262_v24 = vsub.f32 %v2304_v27, %v2358_v55 }
 0x36b   : > { %v1280_v10 = vmul.f32 1.442695, %v1216_v59  ;;  %v1284_v20 = vmul.f32 1.442695, %v1218_v4  ;;  %v1288_v27 = vmul.f32 1.442695, %v1220_v45 }
 0x36c   : > { %v1292_v16 = vmul.f32 1.442695, %v1222_v53  ;;  %v1296_v25 = vmul.f32 1.442695, %v1224_v28  ;;  %v1300_v35 = vmul.f32 1.442695, %v1226_v13 }
 0x36d   : > { %1800 = vpow2.f32 %v1280_v10  ;;  %v1304_v43 = vmul.f32 1.442695, %v1228_v17  ;;  %v1308_v51 = vmul.f32 1.442695, %v1230_v30  ;;  %v1312_v61 = vmul.f32 1.442695, %v1232_v32 }
 0x36e   : > { %1802 = vpow2.f32 %v1284_v20  ;;  %v1316_v2 = vmul.f32 1.442695, %v1234_v34  ;;  %v1320_v59 = vmul.f32 1.442695, %v1236_v19  ;;  %v1324_v4 = vmul.f32 1.442695, %v1238_v42 }
 0x36f   : > { %1804 = vpow2.f32 %v1288_v27  ;;  %v1328_v45 = vmul.f32 1.442695, %v1240_v46  ;;  %v1332_v12 = vmul.f32 1.442695, %v1242_v50  ;;  %v1336_v53 = vmul.f32 1.442695, %v1244_v54 }
 0x370   : > { %1806 = vpow2.f32 %v1292_v16  ;;  %v1340_v57 = vmul.f32 1.442695, %v1246_v58  ;;  %v1344_v22 = vmul.f32 1.442695, %v1248_v62  ;;  %v1348_v10 = vmul.f32 1.442695, %v1250_v3 }
 0x371   : > { %1808 = vpow2.f32 %v1296_v25  ;;  %v1352_v28 = vmul.f32 1.442695, %v1252_v7  ;;  %v1356_v13 = vmul.f32 1.442695, %v1254_v11  ;;  %v1360_v20 = vmul.f32 1.442695, %v1256_v15 }
 0x372   : > { %1810 = vpow2.f32 %v1300_v35  ;;  %v2430_v17 = vmul.f32 1.442695, %v1258_v21  ;;  %v2432_v30 = vmul.f32 1.442695, %v1260_v23  ;;  %v2434_v32 = vmul.f32 1.442695, %v1262_v24 }
 0x373   : > { %1812 = vpow2.f32 %v1304_v43  ;;  %v2896_v15 = vld [vmem:[#allocation8_spill] sm:$0xff]  ;;  %v2898_v27 = vld [vmem:[#allocation10_spill] sm:$0xff]  ;;  %v2899_v35 = vld [vmem:[#allocation11_spill] sm:$0xff] }
 0x374   : > { %1814 = vpow2.f32 %v1308_v51  ;;  %v2900_v51 = vld [vmem:[#allocation12_spill] sm:$0xff]  ;;  %v2902_v11 = vld [vmem:[#allocation14_spill] sm:$0xff]  ;;  %v2903_v7 = vld [vmem:[#allocation15_spill] sm:$0xff] }
 0x375   : > { %1816 = vpow2.f32 %v1312_v61  ;;  %v2897_v61 = vld [vmem:[#allocation9_spill] sm:$0xff]  ;;  %v2904_v43 = vld [vmem:[#allocation16_spill] sm:$0xff]  ;;  %v2906_v54 = vld [vmem:[#allocation18_spill] sm:$0xff] }
 0x376   : > { %1818 = vpow2.f32 %v1316_v2  ;;  %v2905_v58 = vld [vmem:[#allocation17_spill] sm:$0xff]  ;;  %v2907_v16 = vld [vmem:[#allocation19_spill] sm:$0xff]  ;;  %v2908_v42 = vld [vmem:[#allocation20_spill] sm:$0xff] }
 0x377   : > { %v2444_v50 = vpop.eup %1800  ;;  %1820 = vpow2.f32 %v1320_v59  ;;  %v2909_v59 = vld [vmem:[#allocation21_spill] sm:$0xff]  ;;  %v2910_v34 = vld [vmem:[#allocation22_spill] sm:$0xff] }
 0x378   : > { %v2452_v3 = vpop.eup %1802  ;;  %1822 = vpow2.f32 %v1324_v4  ;;  %v2901_v4 = vld [vmem:[#allocation13_spill] sm:$0xff] }
 0x379   : > { %v2460_v23 = vpop.eup %1804  ;;  %1824 = vpow2.f32 %v1328_v45  ;;  %v1410_v24 = vadd.f32 %v2452_v3, %v2444_v50  ;;  %v2914_v45 = vld [vmem:[#allocation26_spill] sm:$0xff] }
 0x37a   : > { %v2468_v25 = vpop.eup %1806  ;;  %1826 = vpow2.f32 %v1332_v12  ;;  %v2912_v12 = vld [vmem:[#allocation24_spill] sm:$0xff] }
 0x37b   : > { %v2476_v21 = vpop.eup %1808  ;;  %1828 = vpow2.f32 %v1336_v53  ;;  %v1411_v2 = vadd.f32 %v2460_v23, %v1410_v24 }
 0x37c   : > { %v2483_v62 = vpop.eup %1810  ;;  %1830 = vpow2.f32 %v1340_v57 }
 0x37d   : > { %v2491_v46 = vpop.eup %1812  ;;  %1832 = vpow2.f32 %v1344_v22  ;;  %v1412_v24 = vadd.f32 %v2468_v25, %v1411_v2 }
 0x37e   : > { %v2498_v19 = vpop.eup %1814  ;;  %1834 = vpow2.f32 %v1348_v10 }
 0x37f   : > { %v2506_v41 = vpop.eup %1816  ;;  %1836 = vpow2.f32 %v1352_v28  ;;  %v1413_v2 = vadd.f32 %v2476_v21, %v1412_v24  ;;  %v2916_v24 = vsub.f32 %v2310_v47, %v2358_v55 }
 0x380   : > { %v2513_v29 = vpop.eup %1818  ;;  %1838 = vpow2.f32 %v1356_v13  ;;  %v2917_v13 = vsub.f32 %v2316_v63, %v2358_v55 }
 0x381   : > { %v2521_v49 = vpop.eup %1820  ;;  %1840 = vpow2.f32 %v1360_v20  ;;  %v1376_v57 = vmul.f32 1.442695, %v2916_v24  ;;  %v1414_v10 = vadd.f32 %v2483_v62, %v1413_v2  ;;  %v2918_v20 = vsub.f32 %v2322_v39, %v2358_v55 }
 0x382   : > { %v2527_v0 = vpop.eup %1822  ;;  %1842 = vpow2.f32 %v2430_v17  ;;  %v1380_v22 = vmul.f32 1.442695, %v2917_v13  ;;  %v2919_v17 = vsub.f32 %v2328_v40, %v2358_v55  ;;  %v2923_v40 = vsub.f32 %v2346_v14, %v2358_v55 }
 0x383   : > { %v2533_v53 = vpop.eup %1824  ;;  %1844 = vpow2.f32 %v2432_v30  ;;  %v1384_v28 = vmul.f32 1.442695, %v2918_v20  ;;  %v1415_v47 = vadd.f32 %v2491_v46, %v1414_v10  ;;  %v2920_v30 = vsub.f32 %v2334_v37, %v2358_v55 }
 0x384   : > { %v2540_v24 = vpop.eup %1826  ;;  %1846 = vpow2.f32 %v2434_v32  ;;  %v1388_v2 = vmul.f32 1.442695, %v2919_v17  ;;  %v2921_v10 = vsub.f32 %v2340_v18, %v2358_v55 }
 0x385   : > { %v2546_v63 = vpop.eup %1828  ;;  %1848 = vpow2.f32 %v1376_v57  ;;  %v1392_v13 = vmul.f32 1.442695, %v2920_v30  ;;  %v1416_v39 = vadd.f32 %v2498_v19, %v1415_v47  ;;  %v1400_v57 = vmul.f32 1.442695, %v2923_v40 }
 0x386   : > { %v2552_v20 = vpop.eup %1830  ;;  %1850 = vpow2.f32 %v1380_v22  ;;  %v1396_v32 = vmul.f32 1.442695, %v2921_v10  ;;  %v2924_v47 = vsub.f32 %v2352_v6, %v2358_v55  ;;  %v2927_v6 = vsub.f32 %v2178_v36, %v2360_v9 }
 0x387   : > { %v2557_v8 = vpop.eup %1832  ;;  %1852 = vpow2.f32 %v1384_v28  ;;  %v1417_v17 = vadd.f32 %v2506_v41, %v1416_v39  ;;  %v2925_v28 = vsub.f32 %v2168_v31, %v2360_v9  ;;  %v2926_v39 = vsub.f32 %v2172_v33, %v2360_v9 }
 0x388   : > { %2922 = vst [vmem:[#allocation8_spill] sm:$0xff] %v2557_v8  ;;  %v2563_v37 = vpop.eup %1834  ;;  %1854 = vpow2.f32 %v1388_v2  ;;  %v1404_v22 = vmul.f32 1.442695, %v2924_v47  ;;  %v1290_v40 = vmul.f32 1.442695, %v2927_v6  ;;  %v2928_v31 = vsub.f32 %v2186_v38, %v2360_v9 }
 0x389   : > { %v2568_v30 = vpop.eup %1836  ;;  %1856 = vpow2.f32 %v1392_v13  ;;  %v1418_v18 = vadd.f32 %v2513_v29, %v1417_v17  ;;  %v1282_v10 = vmul.f32 1.442695, %v2925_v28  ;;  %v1286_v2 = vmul.f32 1.442695, %v2926_v39 }
 0x38a   : > { %v2574_v14 = vpop.eup %1838  ;;  %1858 = vpow2.f32 %v1396_v32  ;;  %v1294_v17 = vmul.f32 1.442695, %v2928_v31  ;;  %v2929_v32 = vsub.f32 %v2193_v44, %v2360_v9  ;;  %v2930_v33 = vsub.f32 %v2199_v48, %v2360_v9 }
 0x38b   : > { %v2582_v47 = vpop.eup %1840  ;;  %1860 = vpow2.f32 %v1400_v57  ;;  %v1419_v13 = vadd.f32 %v2521_v49, %v1418_v18  ;;  %v2931_v57 = vsub.f32 %v2205_v52, %v2360_v9  ;;  %v2932_v18 = vsub.f32 %v2211_v56, %v2360_v9 }
 0x38c   : > { %v1298_v28 = vmul.f32 1.442695, %v2929_v32  ;;  %v2591_v55 = vpop.eup %1842  ;;  %1862 = vpow2.f32 %v1404_v22  ;;  %v1302_v36 = vmul.f32 1.442695, %v2930_v33  ;;  %v2933_v22 = vsub.f32 %v2217_v60, %v2360_v9 }
 0x38d   : > { %v1306_v39 = vmul.f32 1.442695, %v2931_v57  ;;  %v1310_v38 = vmul.f32 1.442695, %v2932_v18  ;;  %v2602_v6 = vpop.eup %1844  ;;  %v1420_v44 = vadd.f32 %v2527_v0, %v1419_v13  ;;  %1864 = vpow2.f32 %v1282_v10 }
 0x38e   : > { %v1314_v31 = vmul.f32 1.442695, %v2933_v22  ;;  %v2934_v48 = vsub.f32 %v2223_v1, %v2360_v9  ;;  %v2611_v33 = vpop.eup %1846  ;;  %1866 = vpow2.f32 %v1286_v2 }
 0x38f   : > { %v2619_v13 = vpop.eup %1848  ;;  %v1421_v60 = vadd.f32 %v2533_v53, %v1420_v44  ;;  %1868 = vpow2.f32 %v1290_v40 }
 0x390   : > { %v1318_v32 = vmul.f32 1.442695, %v2934_v48  ;;  %v2626_v57 = vpop.eup %1850  ;;  %1870 = vpow2.f32 %v1294_v17  ;;  %v2935_v17 = vsub.f32 %v2229_v5, %v2360_v9  ;;  %v2936_v48 = vsub.f32 %v2896_v15, %v2360_v9 }
 0x391   : > { %v2634_v44 = vpop.eup %1852  ;;  %v1422_v40 = vadd.f32 %v2540_v24, %v1421_v60  ;;  %1872 = vpow2.f32 %v1298_v28 }
 0x392   : > { %v2641_v1 = vpop.eup %1854  ;;  %1874 = vpow2.f32 %v1302_v36  ;;  %v1322_v2 = vmul.f32 1.442695, %v2935_v17  ;;  %v1326_v22 = vmul.f32 1.442695, %v2936_v48 }
 0x393   : > { %v2649_v60 = vpop.eup %1856  ;;  %v1423_v28 = vadd.f32 %v2546_v63, %v1422_v40  ;;  %1876 = vpow2.f32 %v1306_v39  ;;  %v2937_v39 = vsub.f32 %v2897_v61, %v2360_v9  ;;  %v2942_v61 = vsub.f32 %v2902_v11, %v2360_v9 }
 0x394   : > { %v2657_v10 = vpop.eup %1858  ;;  %1878 = vpow2.f32 %v1310_v38  ;;  %v2938_v38 = vsub.f32 %v2898_v27, %v2360_v9  ;;  %v2941_v27 = vsub.f32 %v2901_v4, %v2360_v9  ;;  %v2945_v11 = vsub.f32 %v2905_v58, %v2360_v9 }
 0x395   : > { %v2662_v18 = vpop.eup %1860  ;;  %v1424_v56 = vadd.f32 %v2552_v20, %v1423_v28  ;;  %1880 = vpow2.f32 %v1314_v31  ;;  %v1330_v5 = vmul.f32 1.442695, %v2937_v39  ;;  %v2939_v31 = vsub.f32 %v2899_v35, %v2360_v9 }
 0x396   : > { %v2670_v17 = vpop.eup %1862  ;;  %1882 = vpow2.f32 %v1318_v32  ;;  %v1334_v15 = vmul.f32 1.442695, %v2938_v38  ;;  %v2940_v32 = vsub.f32 %v2900_v51, %v2360_v9  ;;  %v1346_v38 = vmul.f32 1.442695, %v2941_v27 }
 0x397   : > { %v1865_v48 = vpop.eup %1864  ;;  %v1425_v36 = vadd.f32 %v2557_v8, %v1424_v56  ;;  %1884 = vpow2.f32 %v1322_v2  ;;  %v1338_v28 = vmul.f32 1.442695, %v2939_v31  ;;  %v2943_v51 = vsub.f32 %v2903_v7, %v2360_v9 }
 0x398   : > { %v1867_v39 = vpop.eup %1866  ;;  %1886 = vpow2.f32 %v1326_v22  ;;  %v1342_v40 = vmul.f32 1.442695, %v2940_v32  ;;  %v1350_v22 = vmul.f32 1.442695, %v2942_v61  ;;  %v1362_v61 = vmul.f32 1.442695, %v2945_v11 }
 0x399   : > { %v1869_v52 = vpop.eup %1868  ;;  %v1426_v56 = vadd.f32 %v2563_v37, %v1425_v36  ;;  %1888 = vpow2.f32 %v1330_v5  ;;  %v1447_v2 = vadd.f32 %v1867_v39, %v1865_v48  ;;  %v1712_v35 = vpack.c.bf16 %v1867_v39, %v1865_v48 }
 0x39a   : > { %v1871_v31 = vpop.eup %1870  ;;  %1890 = vpow2.f32 %v1334_v15  ;;  %v1354_v32 = vmul.f32 1.442695, %v2943_v51  ;;  %v2944_v15 = vsub.f32 %v2904_v43, %v2360_v9  ;;  %v2946_v7 = vpack.c.bf16 %v2452_v3, %v2444_v50 }
 0x39b   : > { %v1873_v8 = vpop.eup %1872  ;;  %v1427_v4 = vadd.f32 %v2568_v30, %v1426_v56  ;;  %1892 = vpow2.f32 %v1338_v28  ;;  %v1448_v27 = vadd.f32 %v1869_v52, %v1447_v2  ;;  %1713 = vmatprep.subr.bf16.mxu0 %v1712_v35  ;;  %v1716_v36 = vpack.c.bf16 %v1871_v31, %v1869_v52 }
 0x39c   : > { %v1875_v5 = vpop.eup %1874  ;;  %1894 = vpow2.f32 %v1342_v40  ;;  %v1358_v48 = vmul.f32 1.442695, %v2944_v15  ;;  %1715 = vmatpush1.bf16.msra.mxu0 %v2946_v7  ;;  %v2947_v43 = vsub.f32 %v2906_v54, %v2360_v9  ;;  %v2948_v58 = vsub.f32 %v2907_v16, %v2360_v9  ;;  %v2953_v7 = vld [vmem:[#allocation23_spill] sm:$0xff] }
 0x39d   : > { %v1877_v39 = vpop.eup %1876  ;;  %v1428_v28 = vadd.f32 %v2574_v14, %v1427_v4  ;;  %1896 = vpow2.f32 %v1346_v38  ;;  %v1449_v56 = vadd.f32 %v1871_v31, %v1448_v27  ;;  %1717 = vmatprep.subr.bf16.mxu0 %v1716_v36  ;;  %v1720_v52 = vpack.c.bf16 %v1875_v5, %v1873_v8 }
 0x39e   : > { %v1879_v40 = vpop.eup %1878  ;;  %1898 = vpow2.f32 %v1350_v22  ;;  %v1366_v2 = vmul.f32 1.442695, %v2947_v43  ;;  %v1370_v35 = vmul.f32 1.442695, %v2948_v58  ;;  %v2949_v31 = vsub.f32 %v2908_v42, %v2360_v9 }
 0x39f   : > { %v1881_v51 = vpop.eup %1880  ;;  %v1429_v50 = vadd.f32 %v2582_v47, %v1428_v28  ;;  %1900 = vpow2.f32 %v1354_v32  ;;  %v1450_v3 = vadd.f32 %v1873_v8, %v1449_v56  ;;  %v1724_v4 = vpack.c.bf16 %v1879_v40, %v1877_v39 }
 0x3a0   : > { %v1883_v38 = vpop.eup %1882  ;;  %1902 = vpow2.f32 %v1358_v48  ;;  %v1374_v22 = vmul.f32 1.442695, %v2949_v31  ;;  %v2950_v54 = vsub.f32 %v2909_v59, %v2360_v9  ;;  %v2951_v16 = vpack.c.bf16 %v2468_v25, %v2460_v23 }
 0x3a1   : > { %v1885_v36 = vpop.eup %1884  ;;  %v1430_v15 = vadd.f32 %v2591_v55, %v1429_v50  ;;  %1904 = vpow2.f32 %v1362_v61  ;;  %v1451_v8 = vadd.f32 %v1875_v5, %v1450_v3  ;;  %v1728_v32 = vpack.c.bf16 %v1883_v38, %v1881_v51 }
 0x3a2   : > { %v1378_v27 = vmul.f32 1.442695, %v2950_v54  ;;  %1719 = vmatpush1.bf16.msra.mxu0 %v2951_v16  ;;  %v1887_v48 = vpop.eup %1886  ;;  %1906 = vpow2.f32 %v1366_v2  ;;  %v2952_v42 = vsub.f32 %v2910_v34, %v2360_v9  ;;  %v2954_v59 = vsub.f32 %v2953_v7, %v2360_v9  ;;  %v2956_v2 = vld [vmem:[#allocation25_spill] sm:$0xff] }
 0x3a3   : > { %1721 = vmatprep.subr.bf16.mxu0 %v1720_v52  ;;  %v1889_v56 = vpop.eup %1888  ;;  %v1431_v23 = vadd.f32 %v2602_v6, %v1430_v15  ;;  %1908 = vpow2.f32 %v1370_v35  ;;  %v1452_v25 = vadd.f32 %v1877_v39, %v1451_v8  ;;  %v1732_v43 = vpack.c.bf16 %v1887_v48, %v1885_v36 }
 0x3a4   : > { %v1382_v11 = vmul.f32 1.442695, %v2952_v42  ;;  %v1386_v28 = vmul.f32 1.442695, %v2954_v59  ;;  %v1891_v61 = vpop.eup %1890  ;;  %1910 = vpow2.f32 %v1374_v22  ;;  %v2955_v5 = vsub.f32 %v2912_v12, %v2360_v9 }
 0x3a5   : > { %v2957_v34 = vsub.f32 %v2956_v2, %v2360_v9  ;;  %v2958_v50 = vpack.c.bf16 %v2483_v62, %v2476_v21  ;;  %v2738_v3 = vpop.eup %1892  ;;  %v1432_v35 = vadd.f32 %v2611_v33, %v1431_v23  ;;  %1912 = vpow2.f32 %v1378_v27  ;;  %v2961_v27 = vld [vmem:[#allocation28_spill] sm:$0xff] }
 0x3a6   : > { %v1390_v52 = vmul.f32 1.442695, %v2955_v5  ;;  %v1453_v39 = vadd.f32 %v1879_v40, %v1452_v25  ;;  %v1736_v31 = vpack.c.bf16 %v1891_v61, %v1889_v56  ;;  %v1895_v22 = vpop.eup %1894  ;;  %1914 = vpow2.f32 %v1382_v11 }
 0x3a7   : > { %v1394_v58 = vmul.f32 1.442695, %v2957_v34  ;;  %1723 = vmatpush1.bf16.msra.mxu0 %v2958_v50  ;;  %v2959_v12 = vsub.f32 %v2914_v45, %v2360_v9  ;;  %v2960_v16 = vsub.f32 %v2915_v26, %v2360_v9  ;;  %v2747_v62 = vpop.eup %1896  ;;  %v1433_v21 = vadd.f32 %v2619_v13, %v1432_v35 }
 0x3a8   : > { %1725 = vmatprep.subr.bf16.mxu0 %v1724_v4  ;;  %1916 = vpow2.f32 %v1386_v28  ;;  %v1454_v8 = vadd.f32 %v1881_v51, %v1453_v39  ;;  %v1740_v40 = vpack.c.bf16 %v1895_v22, %v2738_v3  ;;  %v1899_v4 = vpop.eup %1898  ;;  %v2962_v42 = vsub.f32 %v2961_v27, %v2360_v9 }
 0x3a9   : > { %v1398_v54 = vmul.f32 1.442695, %v2959_v12  ;;  %v1402_v15 = vmul.f32 1.442695, %v2960_v16  ;;  %1918 = vpow2.f32 %v1390_v52  ;;  %v2963_v45 = vpack.c.bf16 %v2498_v19, %v2491_v46  ;;  %v1901_v26 = vpop.eup %1900  ;;  %v2965_v46 = vld [vmem:[#allocation29_spill] sm:$0xff] }
 0x3aa   : > { %v1406_v11 = vmul.f32 1.442695, %v2962_v42  ;;  %v1434_v7 = vadd.f32 %v2626_v57, %v1433_v21  ;;  %1920 = vpow2.f32 %v1394_v58  ;;  %v1455_v59 = vadd.f32 %v1883_v38, %v1454_v8  ;;  %v1903_v28 = vpop.eup %1902 }
 0x3ab   : > { %1727 = vmatpush1.bf16.msra.mxu0 %v2963_v45  ;;  %v1744_v51 = vpack.c.bf16 %v1899_v4, %v2747_v62  ;;  %1922 = vpow2.f32 %v1398_v54  ;;  %v1905_v23 = vpop.eup %1904  ;;  %v1748_v52 = vpack.c.bf16 %v1903_v28, %v1901_v26  ;;  %v2964_v19 = vpack.c.bf16 %v2513_v29, %v2506_v41 }
 0x3ac   : > { %1729 = vmatprep.subr.bf16.mxu0 %v1728_v32  ;;  %v1435_v25 = vadd.f32 %v2634_v44, %v1434_v7  ;;  %1924 = vpow2.f32 %v1402_v15  ;;  %v1456_v5 = vadd.f32 %v1885_v36, %v1455_v59  ;;  %v1907_v2 = vpop.eup %1906  ;;  %v1210_v34 = vsub.f32 -inf, %v2965_v46 }
 0x3ad   : > { %1926 = vpow2.f32 %v1406_v11  ;;  %v1909_v38 = vpop.eup %1908  ;;  %v1752_v50 = vpack.c.bf16 %v1907_v2, %v1905_v23  ;;  %v2966_v15 = vpack.c.bf16 %v2527_v0, %v2521_v49  ;;  %v2967_v7 = vpack.c.bf16 %v2540_v24, %v2533_v53 }
 0x3ae   : > { %v1436_v32 = vadd.f32 %v2641_v1, %v1435_v25  ;;  %v1457_v58 = vadd.f32 %v1887_v48, %v1456_v5  ;;  %v1911_v35 = vpop.eup %1910  ;;  %v1212_v29 = vmul.f32 1.442695, %v1210_v34 }
 0x3af   : > { %1731 = vmatpush1.bf16.msra.mxu0 %v2964_v19  ;;  %v1913_v39 = vpop.eup %1912  ;;  %v1756_v54 = vpack.c.bf16 %v1911_v35, %v1909_v38 }
 0x3b0   : > { %1733 = vmatprep.subr.bf16.mxu0 %v1732_v43  ;;  %v1437_v12 = vadd.f32 %v2649_v60, %v1436_v32  ;;  %v1458_v36 = vadd.f32 %v1889_v56, %v1457_v58  ;;  %v1915_v16 = vpop.eup %1914  ;;  %1928 = vpow2.f32 %v1212_v29  ;;  %v2969_v32 = vld [vmem:[#allocation8_spill] sm:$0xff] }
 0x3b1   : > { %v1760_v48 = vpack.c.bf16 %v1915_v16, %v1913_v39  ;;  %v2970_v58 = vpack.c.bf16 %v2563_v37, %v2969_v32  ;;  %v2972_v37 = vpack.c.bf16 %v2591_v55, %v2582_v47  ;;  %v2975_v47 = vpack.c.bf16 %v2641_v1, %v2634_v44  ;;  %v2978_v1 = vld [vmem:[#allocation6_spill] sm:$0xff] }
 0x3b2   : > { %v1917_v41 = vpop.eup %1916  ;;  %v1438_v21 = vadd.f32 %v2657_v10, %v1437_v12  ;;  %v1459_v8 = vadd.f32 %v1891_v61, %v1458_v36 }
 0x3b3   : > { %1735 = vmatpush1.bf16.msra.mxu0 %v2966_v15  ;;  %v1919_v43 = vpop.eup %1918  ;;  %v2971_v15 = vpack.c.bf16 %v2574_v14, %v2568_v30  ;;  %v2974_v14 = vpack.c.bf16 %v2626_v57, %v2619_v13  ;;  %v457_v57 = vpop.permute.xlu1 %456 }
 0x3b4   : > { %1737 = vmatprep.subr.bf16.mxu0 %v1736_v31  ;;  %v1921_v27 = vpop.eup %1920  ;;  %v1439_v42 = vadd.f32 %v2662_v18, %v1438_v21  ;;  %v1460_v11 = vadd.f32 %v2738_v3, %v1459_v8  ;;  %v1764_v56 = vpack.c.bf16 %v1919_v43, %v1917_v41  ;;  %v2968_v3 = vpack.c.bf16 %v2552_v20, %v2546_v63  ;;  %v2980_v21 = vld [vmem:[#allocation5_spill] sm:$0xff] }
 0x3b5   : > { %v1923_v45 = vpop.eup %1922  ;;  %v559_v44 = vadd.f32 %v2978_v1, %v457_v57  ;;  %v557_v8 = vadd.f32 %v2980_v21, %v457_v57 }
 0x3b6   : > { %v1925_v0 = vpop.eup %1924  ;;  %v1440_v49 = vadd.f32 %v2670_v17, %v1439_v42  ;;  %v1461_v59 = vadd.f32 %v1895_v22, %v1460_v11  ;;  %v1768_v61 = vpack.c.bf16 %v1923_v45, %v1921_v27 }
 0x3b7   : > { %1739 = vmatpush1.bf16.msra.mxu0 %v2967_v7  ;;  %v1927_v31 = vpop.eup %1926 }
 0x3b8   : > { %1741 = vmatprep.subr.bf16.mxu0 %v1740_v40  ;;  %v1441_v25 = vrot.slane %v1440_v49, 4  ;;  %v1462_v5 = vadd.f32 %v2747_v62, %v1461_v59  ;;  %v1772_v19 = vpack.c.bf16 %v1927_v31, %v1925_v0 }
 0x3ba   : > { %v1463_v46 = vadd.f32 %v1899_v4, %v1462_v5  ;;  %v1442_v53 = vadd.f32 %v1441_v25, %v1440_v49  ;;  %v1929_v12 = vpop.eup %1928 }
 0x3bb   : > { %1743 = vmatpush1.bf16.msra.mxu0 %v2968_v3  ;;  %v1408_v20 = vmul.f32 0.0, %v1929_v12  ;;  %v1938_v12 = vld [vmem:[%s2015_s30 + $0x10] sm:$0xff] }
 0x3bc   : > { %1745 = vmatprep.subr.bf16.mxu0 %v1744_v51  ;;  %v1464_v24 = vadd.f32 %v1901_v26, %v1463_v46  ;;  %v1443_v34 = vrot.slane %v1442_v53, 2  ;;  %v1936_v46 = vld [vmem:[%s2015_s30] sm:$0xff] }
 0x3be   : > { %v1465_v22 = vadd.f32 %v1903_v28, %v1464_v24  ;;  %v1444_v40 = vadd.f32 %v1443_v34, %v1442_v53  ;;  %v1937_v34 = vld [vmem:[%s2015_s30 + $0x8] sm:$0xff] }
 0x3bf   : > { %1747 = vmatpush1.bf16.msra.mxu0 %v2970_v58 }
 0x3c0   : > { %1749 = vmatprep.subr.bf16.mxu0 %v1748_v52  ;;  %v1466_v36 = vadd.f32 %v1905_v23, %v1465_v22  ;;  %v1445_v62 = vrot.slane %v1444_v40, 1  ;;  %v2973_v23 = vpack.c.bf16 %v2611_v33, %v2602_v6  ;;  %v2976_v33 = vpack.c.bf16 %v2657_v10, %v2649_v60 }
 0x3c2   : > { %v1467_v63 = vadd.f32 %v1907_v2, %v1466_v36  ;;  %v1446_v4 = vadd.f32 %v1445_v62, %v1444_v40  ;;  %v1211_v2 = vsub.f32 -inf, %v2360_v9  ;;  %v1939_v62 = vld [vmem:[%s2015_s30 + $0x18] sm:$0xff] }
 0x3c3   : > { %1751 = vmatpush1.bf16.msra.mxu0 %v2971_v15 }
 0x3c4   : > { %1753 = vmatprep.subr.bf16.mxu0 %v1752_v50  ;;  %v1468_v26 = vadd.f32 %v1909_v38, %v1467_v63  ;;  %v1484_v51 = vadd.f32 %v1446_v4, %v1408_v20  ;;  %v1214_v50 = vmul.f32 1.442695, %v1211_v2 }
 0x3c6   : > { %v1469_v28 = vadd.f32 %v1911_v35, %v1468_v26  ;;  %1930 = vpow2.f32 %v1214_v50 }
 0x3c7   : > { %1755 = vmatpush1.bf16.msra.mxu0 %v2972_v37  ;;  %1932 = vrcp.f32 %v1484_v51 }
 0x3c8   : > { %1757 = vmatprep.subr.bf16.mxu0 %v1756_v54  ;;  %v1470_v52 = vadd.f32 %v1913_v39, %v1469_v28  ;;  %v2977_v39 = vpack.c.bf16 %v2670_v17, %v2662_v18 }
 0x3ca   : > { %v1471_v29 = vadd.f32 %v1915_v16, %v1470_v52  ;;  %v2979_v16 = vld [vmem:[#allocation7_spill] sm:$0xff] }
 0x3cb   : > { %1759 = vmatpush1.bf16.msra.mxu0 %v2973_v23 }
 0x3cc   : > { %1761 = vmatprep.subr.bf16.mxu0 %v1760_v48  ;;  %v1472_v30 = vadd.f32 %v1917_v41, %v1471_v29 }
 0x3ce   : > { %v1473_v38 = vadd.f32 %v1919_v43, %v1472_v30 }
 0x3cf   : > { %1763 = vmatpush1.bf16.msra.mxu0 %v2974_v14 }
 0x3d0   : > { %1765 = vmatprep.subr.bf16.mxu0 %v1764_v56  ;;  %v1474_v55 = vadd.f32 %v1921_v27, %v1473_v38  ;;  %v1931_v60 = vpop.eup %1930 }
 0x3d1   : > { %v1409_v43 = vmul.f32 0.0, %v1931_v60  ;;  %v1933_v56 = vpop.eup %1932 }
 0x3d2   : > { %v1475_v35 = vadd.f32 %v1923_v45, %v1474_v55  ;;  %v1573_v45 = vstv %s280_s14 }
 0x3d3   : > { %1767 = vmatpush1.bf16.msra.mxu0 %v2975_v47 }
 0x3d4   : > { %1769 = vmatprep.subr.bf16.mxu0 %v1768_v61  ;;  %v1476_v6 = vadd.f32 %v1925_v0, %v1475_v35 }
 0x3d6   : > { %v1477_v13 = vadd.f32 %v1927_v31, %v1476_v6 }
 0x3d7   : > { %1771 = vmatpush1.bf16.msra.mxu0 %v2976_v33 }
 0x3d8   : > { %1773 = vmatprep.subr.bf16.mxu0 %v1772_v19  ;;  %v1478_v9 = vrot.slane %v1477_v13, 4 }
 0x3da   : > { %v1479_v54 = vadd.f32 %v1478_v9, %v1477_v13 }
 0x3db   : > { %1775 = vmatpush1.bf16.msra.mxu0 %v2977_v39 }
 0x3dc   : > { %v1480_v41 = vrot.slane %v1479_v54, 2 }
 0x3de   : > { %1551 = vmatmul.mubr.f32.vlgmr.msra.gmra.mrb[8].mxu0 %v2979_v16  ;;  %v1481_v10 = vadd.f32 %v1480_v41, %v1479_v54 }
 0x3df   : > { %1556 = vmatprep.mubr.f32.mxu0 %v559_v44 }
 0x3e0   : > { %v1482_v48 = vrot.slane %v1481_v10, 1 }
 0x3e2   : > { %1557 = vmatmul.mubr.f32.gmra.mrb[10].mxu0 %v557_v8  ;;  %v1483_v27 = vadd.f32 %v1482_v48, %v1481_v10 }
 0x3e4   : > { %v1485_v42 = vadd.f32 %v1483_v27, %v1409_v43 }
 0x3e6   : > { %1934 = vrcp.f32 %v1485_v42 }
 0x3f0   : > { %v1935_v0 = vpop.eup %1934 }
 0x4b1   : > { %v1552_v18 = vpop.f32.mrb[8].mxu0 }
 0x4b2   : > { %v1563_v17 = vadd.f32 %v1552_v18, %v1408_v20  ;;  %v1554_v11 = vpop.f32.mrb[9].mxu0 }
 0x4b3   : > { %v1564_v7 = vadd.f32 %v1554_v11, %v1409_v43 }
 0x4b4   : > { %v1569_v49 = vmul.f32 %v1933_v56, %v1563_v17 }
 0x4b5   : > { %v1570_v59 = vmul.f32 %v1935_v0, %v1564_v7  ;;  %v1558_v61 = vpop.f32.mrb[10].mxu0 }
 0x4b6   : > { %v1574_v31 = vmul.f32 %v1573_v45, %v1569_v49  ;;  %v1565_v25 = vadd.f32 %v1558_v61, %v1408_v20  ;;  %v1560_v5 = vpop.f32.mrb[11].mxu0 }
 0x4b7   : > { %v1575_v19 = vmul.f32 %v1573_v45, %v1570_v59  ;;  %v1566_v3 = vadd.f32 %v1560_v5, %v1409_v43 }
 0x4b8   : > { %v1578_v53 = vadd.f32 %v1936_v46, %v1574_v31  ;;  %v1571_v24 = vmul.f32 %v1933_v56, %v1565_v25 }
 0x4b9   : > { %v1579_v32 = vadd.f32 %v1937_v34, %v1575_v19  ;;  %v1572_v58 = vmul.f32 %v1935_v0, %v1566_v3 }
 0x4ba   : > { %1582 = vst [vmem:[%s279_s17] sm:$0xff] %v1578_v53  ;;  %v1576_v22 = vmul.f32 %v1573_v45, %v1571_v24 }
 0x4bb   : > { %1583 = vst [vmem:[%s279_s17 + $0x8] sm:$0xff] %v1579_v32  ;;  %v1577_v40 = vmul.f32 %v1573_v45, %v1572_v58 }
 0x4bc   : > { %v1580_v36 = vadd.f32 %v1938_v12, %v1576_v22 }
 0x4bd   : > { %v1581_v15 = vadd.f32 %v1939_v62, %v1577_v40 }
 0x4be   : > { %1584 = vst [vmem:[%s279_s17 + $0x10] sm:$0xff] %v1580_v36 }
 0x4bf   : > { %1585 = vst [vmem:[%s279_s17 + $0x18] sm:$0xff] %v1581_v15 }
 0x4c0 PF: > { %s18_s26 = sadd.s32 1, %s1946_s26  }
 0x4c1   : > { %p15_p4 = scmp.ge.s32.totalorder %s18_s26, 4  }
 0x4c3   :  { %17 = sbr.rel (!%p15_p4) target bundleno = 2 (0x2), region = 78 }

</bundles_post_ra>
